<compile_context>
chip_gen: v7x
topology: tpu7x:2x2x1
jax: 0.10.0
libtpu: 0.0.40
codegen_flags: <defaults>
</compile_context>

<pallas_src>
import functools

import jax
import jax.numpy as jnp
from jax.experimental import pallas as pl
from jax.experimental.pallas import tpu as pltpu


# Fixed KV (high-pass) filter of the XuNet ImageProcessing module, baked as
# Python constants (identical to the PyTorch nn.Parameter deterministic init).
_KV_ROWS = (
    (-1.0,  2.0,  -2.0,  2.0, -1.0),
    ( 2.0, -6.0,   8.0, -6.0,  2.0),
    (-2.0,  8.0, -12.0,  8.0, -2.0),
    ( 2.0, -6.0,   8.0, -6.0,  2.0),
    (-1.0,  2.0,  -2.0,  2.0, -1.0),
)
_KV = tuple(tuple(v / 12.0 for v in row) for row in _KV_ROWS)


def make_kv_filter() -> jnp.ndarray:
    """(5, 5) f32 KV filter, equivalent to the torch (1, 1, 5, 5) parameter."""
    return jnp.asarray(_KV, dtype=jnp.float32)


def _kv_conv_kernel(x_ref, o_ref, xp_ref, *, bp, h, w):
    """One grid step = `bp` independent (batch*channel) planes.

    x_ref  : (bp, H, W)     f32 VMEM  -- unpadded input planes
    o_ref  : (bp, H, W)     f32 VMEM  -- output planes
    xp_ref : (bp, H+4, W+4) f32 VMEM  -- zero-padded staging scratch
    """
    hp, wp = h + 4, w + 4

    # Zero-pad inside VMEM (replaces the old host-side jnp.pad HBM round trip).
    # Full zero + interior overwrite every step: cheap, and safe under megacore
    # grid sharding (no reliance on program_id==0 running on every core).
    xp_ref[...] = jnp.zeros((bp, hp, wp), jnp.float32)
    xp_ref[:, 2:2 + h, 2:2 + w] = x_ref[...].astype(jnp.float32)
    xp = xp_ref[...]

    # Hoist the 5 lane (column-offset) shifts; only the sublane (row) offset
    # changes inside the accumulation loop -> 5 cross-lane realignments, not 25.
    cols = [xp[:, :, dj:dj + w] for dj in range(5)]

    acc = jnp.zeros((bp, h, w), jnp.float32)
    for di in range(5):
        for dj in range(5):
            acc = acc + _KV[di][dj] * cols[dj][:, di:di + h, :]

    o_ref[...] = acc.astype(o_ref.dtype)


def image_processing(x: jnp.ndarray, block_planes=None) -> jnp.ndarray:
    """x: (N, C, H, W) f32 -> (N, C, H, W) f32 (same-padded KV conv per channel)."""
    N, C, H, W = x.shape
    NP = N * C
    Hp, Wp = H + 4, W + 4
    x_flat = x.reshape(NP, H, W)

    if block_planes is None:
        # Per-plane VMEM footprint per grid step (f32):
        #   double-buffered in + out blocks, padded staging scratch,
        #   5 lane-shifted copies + accumulator held as values.
        per_plane_bytes = 4 * (2 * H * W + 2 * H * W + Hp * Wp + 5 * Hp * W + H * W)
        budget_bytes = 12 * 1024 * 1024  # conservative: fits v7x (64 MiB VMEM) easily
        block_planes = max(1, budget_bytes // per_plane_bytes)
        # Keep at least 2 grid steps so a v7x megacore can shard the parallel axis.
        block_planes = min(block_planes, max(1, NP // 2))
    B = int(min(block_planes, NP))

    grid_len = pl.cdiv(NP, B)
    NP_pad = grid_len * B
    if NP_pad != NP:
        # Pad the plane axis with zero planes so the last block never goes OOB.
        pad = jnp.zeros((NP_pad - NP, H, W), x.dtype)
        x_flat = jnp.concatenate([x_flat, pad], axis=0)

    kernel = functools.partial(_kv_conv_kernel, bp=B, h=H, w=W)

    out_flat = pl.pallas_call(
        kernel,
        out_shape=jax.ShapeDtypeStruct((NP_pad, H, W), x.dtype),
        grid=(grid_len,),
        in_specs=[pl.BlockSpec((B, H, W), lambda i: (i, 0, 0))],
        out_specs=pl.BlockSpec((B, H, W), lambda i: (i, 0, 0)),
        scratch_shapes=[pltpu.VMEM((B, Hp, Wp), jnp.float32)],
        compiler_params=pltpu.CompilerParams(
            dimension_semantics=("parallel",),
            vmem_limit_bytes=32 * 1024 * 1024,
        ),
    )(x_flat)

    return out_flat[:NP].reshape(N, C, H, W)


def _reference(x: jnp.ndarray, kv_filter: jnp.ndarray) -> jnp.ndarray:
    """Pure-JAX reference: depthwise conv with the shared 5x5 filter, pad=2."""
    N, C, H, W = x.shape
    w = jnp.broadcast_to(kv_filter[None, None, :, :], (C, 1, 5, 5))
    return jax.lax.conv_general_dilated(
        x, w, window_strides=(1, 1), padding=((2, 2), (2, 2)),
        dimension_numbers=("NCHW", "OIHW", "NCHW"),
        feature_group_count=C,
    )


if __name__ == "__main__":
    key = jax.random.PRNGKey(0)
    N, C, H, W = 2, 4, 16, 16  # c.stego_img_channel == C == 4 here
    x = jax.random.normal(key, (N, C, H, W), dtype=jnp.float32)

    out = jax.block_until_ready(image_processing(x))

    ref = _reference(x, make_kv_filter())
    assert out.shape == (N, C, H, W)
    assert jnp.allclose(out, ref, atol=1e-5, rtol=1e-5), "mismatch vs reference conv"

    print("KERNEL_OK")
</pallas_src>

<mosaic_0001>
module attributes {stable_mosaic.version = 11 : i64} {
  func.func @_kv_conv_kernel(%arg0: i32, %arg1: memref<4x16x16xf32, #tpu.memory_space<vmem>>, %arg2: memref<4x16x16xf32, #tpu.memory_space<vmem>>, %arg3: memref<4x20x20xf32, #tpu.memory_space<vmem>>) attributes {dimension_semantics = [#tpu.dimension_semantics<parallel>], iteration_bounds = array<i64: 2>, scalar_prefetch = 0 : i64, scratch_operands = 1 : i64, tpu.core_type = #tpu.core_type<tc>, window_params = [{transform_indices = @transform_0, window_bounds = array<i64: 4, 16, 16>}, {transform_indices = @transform_1, window_bounds = array<i64: 4, 16, 16>}]} {
    %cst = arith.constant 0.000000e+00 : f32
    %0 = vector.broadcast %cst : f32 to vector<4x20x20xf32>
    %c0 = arith.constant 0 : index
    %c0_0 = arith.constant 0 : index
    %c0_1 = arith.constant 0 : index
    %1 = vector.load %arg3[%c0, %c0_0, %c0_1] : memref<4x20x20xf32, #tpu.memory_space<vmem>>, vector<4x20x20xf32>
    tpu.vector_store %arg3[%c0, %c0_0, %c0_1], %0 {strides = array<i32>} : memref<4x20x20xf32, #tpu.memory_space<vmem>>, vector<4x20x20xf32>,
    %c0_2 = arith.constant 0 : index
    %c0_3 = arith.constant 0 : index
    %c0_4 = arith.constant 0 : index
    %2 = vector.load %arg1[%c0_2, %c0_3, %c0_4] : memref<4x16x16xf32, #tpu.memory_space<vmem>>, vector<4x16x16xf32>
    %c0_5 = arith.constant 0 : index
    %c2 = arith.constant 2 : index
    %c2_6 = arith.constant 2 : index
    %3 = vector.load %arg3[%c0_5, %c2, %c2_6] : memref<4x20x20xf32, #tpu.memory_space<vmem>>, vector<4x16x16xf32>
    tpu.vector_store %arg3[%c0_5, %c2, %c2_6], %2 {strides = array<i32>} : memref<4x20x20xf32, #tpu.memory_space<vmem>>, vector<4x16x16xf32>,
    %c0_7 = arith.constant 0 : index
    %c0_8 = arith.constant 0 : index
    %c0_9 = arith.constant 0 : index
    %4 = vector.load %arg3[%c0_7, %c0_8, %c0_9] : memref<4x20x20xf32, #tpu.memory_space<vmem>>, vector<4x20x20xf32>
    %5 = vector.extract_strided_slice %4 {offsets = [0, 0, 0], sizes = [4, 20, 16], strides = [1, 1, 1]} : vector<4x20x20xf32> to vector<4x20x16xf32>
    %6 = vector.extract_strided_slice %4 {offsets = [0, 0, 1], sizes = [4, 20, 16], strides = [1, 1, 1]} : vector<4x20x20xf32> to vector<4x20x16xf32>
    %7 = vector.extract_strided_slice %4 {offsets = [0, 0, 2], sizes = [4, 20, 16], strides = [1, 1, 1]} : vector<4x20x20xf32> to vector<4x20x16xf32>
    %8 = vector.extract_strided_slice %4 {offsets = [0, 0, 3], sizes = [4, 20, 16], strides = [1, 1, 1]} : vector<4x20x20xf32> to vector<4x20x16xf32>
    %9 = vector.extract_strided_slice %4 {offsets = [0, 0, 4], sizes = [4, 20, 16], strides = [1, 1, 1]} : vector<4x20x20xf32> to vector<4x20x16xf32>
    %cst_10 = arith.constant 0.000000e+00 : f32
    %10 = vector.broadcast %cst_10 : f32 to vector<4x16x16xf32>
    %11 = vector.extract_strided_slice %5 {offsets = [0, 0, 0], sizes = [4, 16, 16], strides = [1, 1, 1]} : vector<4x20x16xf32> to vector<4x16x16xf32>
    %cst_11 = arith.constant -0.0833333358 : f32
    %12 = vector.broadcast %cst_11 : f32 to vector<4x16x16xf32>
    %13 = arith.mulf %12, %11 : vector<4x16x16xf32>
    %14 = arith.addf %10, %13 : vector<4x16x16xf32>
    %15 = vector.extract_strided_slice %6 {offsets = [0, 0, 0], sizes = [4, 16, 16], strides = [1, 1, 1]} : vector<4x20x16xf32> to vector<4x16x16xf32>
    %cst_12 = arith.constant 0.166666672 : f32
    %16 = vector.broadcast %cst_12 : f32 to vector<4x16x16xf32>
    %17 = arith.mulf %16, %15 : vector<4x16x16xf32>
    %18 = arith.addf %14, %17 : vector<4x16x16xf32>
    %19 = vector.extract_strided_slice %7 {offsets = [0, 0, 0], sizes = [4, 16, 16], strides = [1, 1, 1]} : vector<4x20x16xf32> to vector<4x16x16xf32>
    %cst_13 = arith.constant -0.166666672 : f32
    %20 = vector.broadcast %cst_13 : f32 to vector<4x16x16xf32>
    %21 = arith.mulf %20, %19 : vector<4x16x16xf32>
    %22 = arith.addf %18, %21 : vector<4x16x16xf32>
    %23 = vector.extract_strided_slice %8 {offsets = [0, 0, 0], sizes = [4, 16, 16], strides = [1, 1, 1]} : vector<4x20x16xf32> to vector<4x16x16xf32>
    %cst_14 = arith.constant 0.166666672 : f32
    %24 = vector.broadcast %cst_14 : f32 to vector<4x16x16xf32>
    %25 = arith.mulf %24, %23 : vector<4x16x16xf32>
    %26 = arith.addf %22, %25 : vector<4x16x16xf32>
    %27 = vector.extract_strided_slice %9 {offsets = [0, 0, 0], sizes = [4, 16, 16], strides = [1, 1, 1]} : vector<4x20x16xf32> to vector<4x16x16xf32>
    %cst_15 = arith.constant -0.0833333358 : f32
    %28 = vector.broadcast %cst_15 : f32 to vector<4x16x16xf32>
    %29 = arith.mulf %28, %27 : vector<4x16x16xf32>
    %30 = arith.addf %26, %29 : vector<4x16x16xf32>
    %31 = vector.extract_strided_slice %5 {offsets = [0, 1, 0], sizes = [4, 16, 16], strides = [1, 1, 1]} : vector<4x20x16xf32> to vector<4x16x16xf32>
    %cst_16 = arith.constant 0.166666672 : f32
    %32 = vector.broadcast %cst_16 : f32 to vector<4x16x16xf32>
    %33 = arith.mulf %32, %31 : vector<4x16x16xf32>
    %34 = arith.addf %30, %33 : vector<4x16x16xf32>
    %35 = vector.extract_strided_slice %6 {offsets = [0, 1, 0], sizes = [4, 16, 16], strides = [1, 1, 1]} : vector<4x20x16xf32> to vector<4x16x16xf32>
    %cst_17 = arith.constant -5.000000e-01 : f32
    %36 = vector.broadcast %cst_17 : f32 to vector<4x16x16xf32>
    %37 = arith.mulf %36, %35 : vector<4x16x16xf32>
    %38 = arith.addf %34, %37 : vector<4x16x16xf32>
    %39 = vector.extract_strided_slice %7 {offsets = [0, 1, 0], sizes = [4, 16, 16], strides = [1, 1, 1]} : vector<4x20x16xf32> to vector<4x16x16xf32>
    %cst_18 = arith.constant 0.666666686 : f32
    %40 = vector.broadcast %cst_18 : f32 to vector<4x16x16xf32>
    %41 = arith.mulf %40, %39 : vector<4x16x16xf32>
    %42 = arith.addf %38, %41 : vector<4x16x16xf32>
    %43 = vector.extract_strided_slice %8 {offsets = [0, 1, 0], sizes = [4, 16, 16], strides = [1, 1, 1]} : vector<4x20x16xf32> to vector<4x16x16xf32>
    %cst_19 = arith.constant -5.000000e-01 : f32
    %44 = vector.broadcast %cst_19 : f32 to vector<4x16x16xf32>
    %45 = arith.mulf %44, %43 : vector<4x16x16xf32>
    %46 = arith.addf %42, %45 : vector<4x16x16xf32>
    %47 = vector.extract_strided_slice %9 {offsets = [0, 1, 0], sizes = [4, 16, 16], strides = [1, 1, 1]} : vector<4x20x16xf32> to vector<4x16x16xf32>
    %cst_20 = arith.constant 0.166666672 : f32
    %48 = vector.broadcast %cst_20 : f32 to vector<4x16x16xf32>
    %49 = arith.mulf %48, %47 : vector<4x16x16xf32>
    %50 = arith.addf %46, %49 : vector<4x16x16xf32>
    %51 = vector.extract_strided_slice %5 {offsets = [0, 2, 0], sizes = [4, 16, 16], strides = [1, 1, 1]} : vector<4x20x16xf32> to vector<4x16x16xf32>
    %cst_21 = arith.constant -0.166666672 : f32
    %52 = vector.broadcast %cst_21 : f32 to vector<4x16x16xf32>
    %53 = arith.mulf %52, %51 : vector<4x16x16xf32>
    %54 = arith.addf %50, %53 : vector<4x16x16xf32>
    %55 = vector.extract_strided_slice %6 {offsets = [0, 2, 0], sizes = [4, 16, 16], strides = [1, 1, 1]} : vector<4x20x16xf32> to vector<4x16x16xf32>
    %cst_22 = arith.constant 0.666666686 : f32
    %56 = vector.broadcast %cst_22 : f32 to vector<4x16x16xf32>
    %57 = arith.mulf %56, %55 : vector<4x16x16xf32>
    %58 = arith.addf %54, %57 : vector<4x16x16xf32>
    %59 = vector.extract_strided_slice %7 {offsets = [0, 2, 0], sizes = [4, 16, 16], strides = [1, 1, 1]} : vector<4x20x16xf32> to vector<4x16x16xf32>
    %cst_23 = arith.constant -1.000000e+00 : f32
    %60 = vector.broadcast %cst_23 : f32 to vector<4x16x16xf32>
    %61 = arith.mulf %60, %59 : vector<4x16x16xf32>
    %62 = arith.addf %58, %61 : vector<4x16x16xf32>
    %63 = vector.extract_strided_slice %8 {offsets = [0, 2, 0], sizes = [4, 16, 16], strides = [1, 1, 1]} : vector<4x20x16xf32> to vector<4x16x16xf32>
    %cst_24 = arith.constant 0.666666686 : f32
    %64 = vector.broadcast %cst_24 : f32 to vector<4x16x16xf32>
    %65 = arith.mulf %64, %63 : vector<4x16x16xf32>
    %66 = arith.addf %62, %65 : vector<4x16x16xf32>
    %67 = vector.extract_strided_slice %9 {offsets = [0, 2, 0], sizes = [4, 16, 16], strides = [1, 1, 1]} : vector<4x20x16xf32> to vector<4x16x16xf32>
    %cst_25 = arith.constant -0.166666672 : f32
    %68 = vector.broadcast %cst_25 : f32 to vector<4x16x16xf32>
    %69 = arith.mulf %68, %67 : vector<4x16x16xf32>
    %70 = arith.addf %66, %69 : vector<4x16x16xf32>
    %71 = vector.extract_strided_slice %5 {offsets = [0, 3, 0], sizes = [4, 16, 16], strides = [1, 1, 1]} : vector<4x20x16xf32> to vector<4x16x16xf32>
    %cst_26 = arith.constant 0.166666672 : f32
    %72 = vector.broadcast %cst_26 : f32 to vector<4x16x16xf32>
    %73 = arith.mulf %72, %71 : vector<4x16x16xf32>
    %74 = arith.addf %70, %73 : vector<4x16x16xf32>
    %75 = vector.extract_strided_slice %6 {offsets = [0, 3, 0], sizes = [4, 16, 16], strides = [1, 1, 1]} : vector<4x20x16xf32> to vector<4x16x16xf32>
    %cst_27 = arith.constant -5.000000e-01 : f32
    %76 = vector.broadcast %cst_27 : f32 to vector<4x16x16xf32>
    %77 = arith.mulf %76, %75 : vector<4x16x16xf32>
    %78 = arith.addf %74, %77 : vector<4x16x16xf32>
    %79 = vector.extract_strided_slice %7 {offsets = [0, 3, 0], sizes = [4, 16, 16], strides = [1, 1, 1]} : vector<4x20x16xf32> to vector<4x16x16xf32>
    %cst_28 = arith.constant 0.666666686 : f32
    %80 = vector.broadcast %cst_28 : f32 to vector<4x16x16xf32>
    %81 = arith.mulf %80, %79 : vector<4x16x16xf32>
    %82 = arith.addf %78, %81 : vector<4x16x16xf32>
    %83 = vector.extract_strided_slice %8 {offsets = [0, 3, 0], sizes = [4, 16, 16], strides = [1, 1, 1]} : vector<4x20x16xf32> to vector<4x16x16xf32>
    %cst_29 = arith.constant -5.000000e-01 : f32
    %84 = vector.broadcast %cst_29 : f32 to vector<4x16x16xf32>
    %85 = arith.mulf %84, %83 : vector<4x16x16xf32>
    %86 = arith.addf %82, %85 : vector<4x16x16xf32>
    %87 = vector.extract_strided_slice %9 {offsets = [0, 3, 0], sizes = [4, 16, 16], strides = [1, 1, 1]} : vector<4x20x16xf32> to vector<4x16x16xf32>
    %cst_30 = arith.constant 0.166666672 : f32
    %88 = vector.broadcast %cst_30 : f32 to vector<4x16x16xf32>
    %89 = arith.mulf %88, %87 : vector<4x16x16xf32>
    %90 = arith.addf %86, %89 : vector<4x16x16xf32>
    %91 = vector.extract_strided_slice %5 {offsets = [0, 4, 0], sizes = [4, 16, 16], strides = [1, 1, 1]} : vector<4x20x16xf32> to vector<4x16x16xf32>
    %cst_31 = arith.constant -0.0833333358 : f32
    %92 = vector.broadcast %cst_31 : f32 to vector<4x16x16xf32>
    %93 = arith.mulf %92, %91 : vector<4x16x16xf32>
    %94 = arith.addf %90, %93 : vector<4x16x16xf32>
    %95 = vector.extract_strided_slice %6 {offsets = [0, 4, 0], sizes = [4, 16, 16], strides = [1, 1, 1]} : vector<4x20x16xf32> to vector<4x16x16xf32>
    %cst_32 = arith.constant 0.166666672 : f32
    %96 = vector.broadcast %cst_32 : f32 to vector<4x16x16xf32>
    %97 = arith.mulf %96, %95 : vector<4x16x16xf32>
    %98 = arith.addf %94, %97 : vector<4x16x16xf32>
    %99 = vector.extract_strided_slice %7 {offsets = [0, 4, 0], sizes = [4, 16, 16], strides = [1, 1, 1]} : vector<4x20x16xf32> to vector<4x16x16xf32>
    %cst_33 = arith.constant -0.166666672 : f32
    %100 = vector.broadcast %cst_33 : f32 to vector<4x16x16xf32>
    %101 = arith.mulf %100, %99 : vector<4x16x16xf32>
    %102 = arith.addf %98, %101 : vector<4x16x16xf32>
    %103 = vector.extract_strided_slice %8 {offsets = [0, 4, 0], sizes = [4, 16, 16], strides = [1, 1, 1]} : vector<4x20x16xf32> to vector<4x16x16xf32>
    %cst_34 = arith.constant 0.166666672 : f32
    %104 = vector.broadcast %cst_34 : f32 to vector<4x16x16xf32>
    %105 = arith.mulf %104, %103 : vector<4x16x16xf32>
    %106 = arith.addf %102, %105 : vector<4x16x16xf32>
    %107 = vector.extract_strided_slice %9 {offsets = [0, 4, 0], sizes = [4, 16, 16], strides = [1, 1, 1]} : vector<4x20x16xf32> to vector<4x16x16xf32>
    %cst_35 = arith.constant -0.0833333358 : f32
    %108 = vector.broadcast %cst_35 : f32 to vector<4x16x16xf32>
    %109 = arith.mulf %108, %107 : vector<4x16x16xf32>
    %110 = arith.addf %106, %109 : vector<4x16x16xf32>
    %c0_36 = arith.constant 0 : index
    %c0_37 = arith.constant 0 : index
    %c0_38 = arith.constant 0 : index
    %111 = vector.load %arg2[%c0_36, %c0_37, %c0_38] : memref<4x16x16xf32, #tpu.memory_space<vmem>>, vector<4x16x16xf32>
    tpu.vector_store %arg2[%c0_36, %c0_37, %c0_38], %110 {strides = array<i32>} : memref<4x16x16xf32, #tpu.memory_space<vmem>>, vector<4x16x16xf32>,
    return
  }
  func.func @transform_0(%arg0: i32) -> (i32, i32, i32) {
    %c0_i32 = arith.constant 0 : i32
    %c0_i32_0 = arith.constant 0 : i32
    %c0_i32_1 = arith.constant 0 : i32
    return %arg0, %c0_i32, %c0_i32_0 : i32, i32, i32
  }
  func.func @transform_1(%arg0: i32) -> (i32, i32, i32) {
    %c0_i32 = arith.constant 0 : i32
    %c0_i32_0 = arith.constant 0 : i32
    %c0_i32_1 = arith.constant 0 : i32
    return %arg0, %c0_i32, %c0_i32_0 : i32, i32, i32
  }
}

</mosaic_0001>

<bundles_post_ra>
// kernel: tpu_custom_call.1
= control target key start
LH: loop header
LB: loop body
LE: loop exit
PB: predicated region body
PF: predicated region fallthrough
CT: control target
= control target key end

     0   :  { %6 = vsyncpa [#allocation4], 0  ;;  %s2966_s0 = inlined_call_operand.hbm [shape: f32[8,16,16], index: 0, kind: input, shape index: {}]   ;;  %s2967_s1 = inlined_call_operand.hbm [shape: f32[8,16,16], index: 1, kind: output, shape index: {}]  }
   0x1   :  { %8 = vsyncpa [#allocation4 + $0x1], 0 }
   0x2   :  { %9 = vsyncpa [#allocation5], 0 }
   0x3   :  { %11 = vsyncpa [#allocation5 + $0x1], 0  ;;  %s1609_s6 = smov 0   ;;  %s1611_s7 = smov 0  }
   0x4   :  { %s1613_s8 = smov 0   ;;  %s1615_s9 = smov 0  }
   0x5 LB: > { %s1630_s10 = sadd.s32 4294967295, %s1585_s9   ;;  %s1410_s11 = sadd.s32 4294967294, %s1585_s9   ;;  %s1585_s9 = sphi %s1615_s9, %s3271_s9   ;;  %s1581_s8 = sphi %s1613_s8, %s3270_s8   ;;  %s1577_s7 = sphi %s1611_s7, %s3269_s7   ;;  %s1573_s6 = sphi %s1609_s6, %s3268_s6  }
   0x6   : > { %s1634_s12 = sadd.s32 1, %s1585_s9   ;;  %s24_s13 = sadd.s32 1, %s1581_s8 }
   0x7   : > { %s21_s14 = ssub.s32 %s1585_s9, %s1634_s12  ;;  %p31_p0 = scmp.ne.s32.totalorder %s1581_s8, %s1577_s7 }
   0x8   : > { %p22_p1 = scmp.eq.s32.totalorder %s21_s14, 0  ;;  %p32_p2 = scmp.eq.s32.totalorder %s1585_s9, 0 }
   0x9   : > { %p37_p3 = scmp.ne.s32.totalorder %s1577_s7, %s1573_s6  ;;  %p38_p4 = scmp.eq.s32.totalorder %s1630_s10, 0 }
   0xa   : > { %s1646_s15 = scalar_select %p22_p1, %s1581_s8, %s24_s13  }
   0xb   : > { %p1648_p5 = por %p32_p2, %p31_p0  ;;  %p1652_p6 = por %p38_p4, %p37_p3 }
   0xc   : > { %p61_p7 = scmp.eq.s32.totalorder %s1630_s10, 1  ;;  %p67_p8 = scmp.eq.s32.totalorder %s1410_s11, 1 }
   0xd   : > { %p1442_p10 = scmp.lt.s32.totalorder %s1585_s9, 2  ;;  %s87_s20 = sand.u32 1, %s1581_s8  }
   0xe   : > { %p1659_p11 = por %p61_p7, %p31_p0  ;;  %p1663_p12 = por %p67_p8, %p37_p3 }
   0xf   : > { %s1427_s21 = sshll.u32 %s1585_s9, 10  ;;  %s1413_s22 = sshll.u32 %s87_s20, 6 }
  0x10   : > { %s3049_s18 = scalar_select %p1659_p11, 1, 0 }
  0x11   : > { %s3050_s19 = scalar_select %p1663_p12, 1, 0 }
  0x12   : > { %s1672_s25 = scalar_lea.hbm %s2966_s0, %s1427_s21  ;;  %s91_s26 = scalar_lea.vmem [#allocation3], %s1413_s22 }
  0x13   : > { %s99_s27 = sshll.u32 %s91_s26, 4  ;;  %p1676_p13 = pnand %p1442_p10, %p1648_p5  ;;  %s1680_s27 = int_to_ptr.vmem [resolvable:$true] %s99_s27 }
  0x14   : > { %s1682_s29 = scalar_lea.sflag [#allocation4], %s87_s20  ;;  %s1489_s30 = scalar_lea.hbm %s1672_s25, 1024 }
  0x15   : > { %p1490_p0 = scmp.ne.s32.totalorder %s1672_s25, %s1489_s30  ;;  %p1491_p1 = pneg %p1676_p13 }
  0x16   : > { %s1494_s4 = scalar_lea.hbm %s2966_s0, 2048  ;;  %p1495_p4 = scmp.lt.u32.totalorder %s1672_s25, %s2966_s0 }
  0x17   : > { %p1492_p2 = pnand %p1491_p1, %p1490_p0  ;;  %p1496_p5 = scmp.lt.u32.totalorder %s1494_s4, %s1489_s30 }
  0x18   : > { %p1498_p8 = scmp.lt.u32.totalorder %s1489_s30, %s1672_s25 }
  0x19   : > { %p1493_p3 = pneg %p1492_p2  ;;  %p1497_p7 = por %p1496_p5, %p1495_p4 }
  0x1b   : > { %p1499_p10 = por %p1498_p8, %p1497_p7 }
  0x1d   : > { %p1500_p9 = pnand %p1499_p10, %p1493_p3 }
  0x1f   : > { %1503 = shalt.err (!%p1500_p9)
}
  0x20   : > { %s1504_s13 = scalar_lea.vmem %s1680_s27, 1024  ;;  %s1587_s14 = smov [#allocation3]  }
  0x21   : > { %p1505_p0 = scmp.ne.s32.totalorder %s1680_s27, %s1504_s13  ;;  %s1509_s16 = sshll.u32 %s1587_s14, 4  ;;  %s1510_s16 = int_to_ptr.vmem [resolvable:$false] %s1509_s16 }
  0x22   : > { %s1511_s20 = scalar_lea.vmem %s1510_s16, 2048  ;;  %p1512_p11 = scmp.lt.s32.totalorder %s1680_s27, %s1510_s16 }
  0x23   : > { %p1507_p2 = pnand %p1505_p0, %p1491_p1  ;;  %p1513_p4 = scmp.lt.s32.totalorder %s1511_s20, %s1504_s13 }
  0x25   : > { %p1508_p12 = pneg %p1507_p2  ;;  %p1514_p5 = por %p1513_p4, %p1512_p11 }
  0x27   : > { %p1515_p7 = pnand %p1514_p5, %p1508_p12 }
  0x29   : > { %1518 = shalt.err (!%p1515_p7)
}
  0x2a   : > { %s1588_s21 = smov 128   ;;  %s1589_s22 = smov 8  }
  0x2b   : > { %1437 = dma.hbm_to_vmem [thread:$0]  (!%p1676_p13), %s1672_s25, 1024, %s1680_s27, %s1682_s29, %s1588_s21, %s1588_s21, %s1589_s22  }
  0x2c   : > { %p1417_p9 = scmp.ge.s32.totalorder %s1585_s9, 1  ;;  %p107_p1 = scmp.lt.s32.totalorder %s1585_s9, 3 }
  0x2e   : > { %p108_p3 = pnand %p1417_p9, %p107_p1 }
  0x30   : > { %111 = sbr.rel (%p108_p3) target bundleno = 638 (0x27e), region = 24 }
  0x37   : > { %s1713_s23 = sand.u32 1, %s1577_s7  }
  0x38   : > { %s1418_s24 = sshll.u32 %s1713_s23, 6  ;;  %s114_s26 = scalar_lea.sflag [#allocation4], %s1713_s23 }
  0x39   : > { %s1719_s30 = scalar_lea.vmem [#allocation3], %s1418_s24 }
  0x3a   : > { %1564 = dma.done.wait (%p1652_p6), %s114_s26, 1024  }
  0x3b   : > { %1566 = vsyncadd (%p1652_p6), %s114_s26, 4294966272  ;;  %vm138_vm0 = vcmask 162816   ;;  %vm141_vm1 = vcmask 158720   ;;  %v1590_v0 = vmov 0.0   ;;  %v154_v1 = vld [vmem:[%s1719_s30 + $0x10] sm:$0xff]  ;;  %v152_v2 = vld [vmem:[%s1719_s30] sm:$0xff] }
  0x3c   : > { %143 = vst.msk [vmem:[#allocation2 + $0x18] sm:$0xff] %vm138_vm0, %v1590_v0  ;;  %144 = vst.msk [vmem:[#allocation2 + $0x20] sm:$0xff] %vm138_vm0, %v1590_v0  ;;  %s1591_s17 = smov 2   ;;  %v155_v3 = vld [vmem:[%s1719_s30 + $0x18] sm:$0xff]  ;;  %v153_v4 = vld [vmem:[%s1719_s30 + $0x8] sm:$0xff]  ;;  %vm192_vm2 = vcmask 146448  }
  0x3d   : > { %139 = vst.msk [vmem:[#allocation2] sm:$0xff] %vm138_vm0, %v1590_v0  ;;  %140 = vst.msk [vmem:[#allocation2 + $0x8] sm:$0xff] %vm138_vm0, %v1590_v0  ;;  %172 = vrot.lane.b32.xlu1 %v154_v1, %s1591_s17  ;;  %168 = vrot.lane.b32.xlu0 %v152_v2, %s1591_s17  ;;  %v156_v5 = vld [vmem:[%s1719_s30 + $0x20] sm:$0xff]  ;;  %v157_v6 = vld [vmem:[%s1719_s30 + $0x28] sm:$0xff]  ;;  %s1592_s25 = smov 127   ;;  %vm405_vm3 = vcmask 1046528  }
  0x3e   : > { %146 = vst.msk [vmem:[#allocation2 + $0x30] sm:$0xff] %vm138_vm0, %v1590_v0  ;;  %147 = vst.msk [vmem:[#allocation2 + $0x38] sm:$0xff] %vm138_vm0, %v1590_v0  ;;  %v158_v7 = vld [vmem:[%s1719_s30 + $0x30] sm:$0xff]  ;;  %v159_v8 = vld [vmem:[%s1719_s30 + $0x38] sm:$0xff]  ;;  %s1593_s27 = smov 126   ;;  %vm666_vm4 = vcmask 1045504  }
  0x3f   : > { %149 = vst.msk [vmem:[#allocation2 + $0x48] sm:$0xff] %vm138_vm0, %v1590_v0  ;;  %150 = vst.msk [vmem:[#allocation2 + $0x50] sm:$0xff] %vm138_vm0, %v1590_v0  ;;  %s1594_s28 = smov 125   ;;  %vm895_vm5 = vcmask 1044480   ;;  %s1595_s29 = smov 124   ;;  %vm1108_vm6 = vcmask 1043456  }
  0x40   : > { %145 = vst.msk [vmem:[#allocation2 + $0x28] sm:$0xf] %vm141_vm1, %v1590_v0  ;;  %142 = vst.msk [vmem:[#allocation2 + $0x10] sm:$0xf] %vm141_vm1, %v1590_v0  ;;  %vm1313_vm7 = vcmask 130048   ;;  %s2897_s2 = scalar_lea.vmem [#allocation6], %s1418_s24 }
  0x41   : > { %148 = vst.msk [vmem:[#allocation2 + $0x40] sm:$0xf] %vm141_vm1, %v1590_v0  ;;  %151 = vst.msk [vmem:[#allocation2 + $0x58] sm:$0xf] %vm141_vm1, %v1590_v0  ;;  %174 = vrot.lane.b32.xlu1 %v155_v3, %s1591_s17  ;;  %170 = vrot.lane.b32.xlu0 %v153_v4, %s1591_s17  ;;  %s1429_s3 = sshll.u32 %s1630_s10, 10  ;;  %s1337_s4 = sshll.u32 %s2897_s2, 4  ;;  %s2920_s4 = int_to_ptr.vmem [resolvable:$true] %s1337_s4 }
  0x42   : > { %s2918_s13 = scalar_lea.hbm %s2967_s1, %s1429_s3  ;;  %s1323_s10 = scalar_lea.sflag [#allocation5], %s1713_s23 }
  0x43   : > { %s1519_s14 = scalar_lea.vmem %s2920_s4, 1024  ;;  %p3265_p11 = scmp.ne.s32.totalorder %s3049_s18, 0 }
  0x44   : > { %p1520_p6 = scmp.ne.s32.totalorder %s2920_s4, %s1519_s14  ;;  %s1596_s16 = smov [#allocation6]  }
  0x45   : > { %176 = vrot.lane.b32.xlu0 %v156_v5, %s1591_s17  ;;  %178 = vrot.lane.b32.xlu1 %v157_v6, %s1591_s17  ;;  %s1523_s20 = sshll.u32 %s1596_s16, 4  ;;  %s1524_s20 = int_to_ptr.vmem [resolvable:$false] %s1523_s20 }
  0x46   : > { %p1521_p12 = pnand %p1520_p6, %p3265_p11  ;;  %s1525_s21 = scalar_lea.vmem %s1524_s20, 2048 }
  0x47   : > { %p1526_p8 = scmp.lt.s32.totalorder %s2920_s4, %s1524_s20  ;;  %p1527_p10 = scmp.lt.s32.totalorder %s1525_s21, %s1519_s14 }
  0x48   : > { %p1522_p13 = pneg %p1521_p12 }
  0x49   : > { %180 = vrot.lane.b32.xlu0 %v158_v7, %s1591_s17  ;;  %182 = vrot.lane.b32.xlu1 %v159_v8, %s1591_s17  ;;  %p1528_p0 = por %p1527_p10, %p1526_p8 }
  0x4b   : > { %p1529_p2 = pnand %p1528_p0, %p1522_p13 }
  0xaf   : > { %v173_v9 = vpop.permute.xlu1 %172  ;;  %v169_v10 = vpop.permute.xlu0 %168 }
  0xb0   : > { %195 = vst.msk [vmem:[#allocation2 + $0x1a] sm:$0xff] %vm192_vm2, %v173_v9  ;;  %193 = vst.msk [vmem:[#allocation2 + $0x2] sm:$0xff] %vm192_vm2, %v169_v10 }
  0xb3   : > { %v175_v11 = vpop.permute.xlu1 %174  ;;  %v171_v12 = vpop.permute.xlu0 %170 }
  0xb4   : > { %196 = vst.msk [vmem:[#allocation2 + $0x22] sm:$0xff] %vm192_vm2, %v175_v11  ;;  %194 = vst.msk [vmem:[#allocation2 + $0xa] sm:$0xff] %vm192_vm2, %v171_v12 }
  0xb7   : > { %v177_v13 = vpop.permute.xlu0 %176  ;;  %v1737_v14 = vld [vmem:[#allocation2] sm:$0xff]  ;;  %v179_v15 = vpop.permute.xlu1 %178  ;;  %v1739_v16 = vld [vmem:[#allocation2 + $0x18] sm:$0xff] }
  0xb8   : > { %197 = vst.msk [vmem:[#allocation2 + $0x32] sm:$0xff] %vm192_vm2, %v177_v13  ;;  %v1743_v17 = vmul.f32 0.16666667, %v1737_v14  ;;  %198 = vst.msk [vmem:[#allocation2 + $0x3a] sm:$0xff] %vm192_vm2, %v179_v15  ;;  %v1749_v18 = vmul.f32 0.16666667, %v1739_v16 }
  0xb9   : > { %v1789_v32 = vmul.f32 -0.16666667, %v1737_v14  ;;  %v1792_v33 = vmul.f32 -0.16666667, %v1739_v16  ;;  %v1802_v35 = vmul.f32 0.6666667, %v1737_v14 }
  0xba   : > { %245 = vrot.lane.b32.xlu0 %v1743_v17, %s1592_s25  ;;  %v1805_v36 = vmul.f32 0.6666667, %v1739_v16  ;;  %v1808_v37 = vmul.f32 -0.083333336, %v1737_v14  ;;  %v1811_v38 = vmul.f32 -0.083333336, %v1739_v16 }
  0xbb   : > { %v181_v19 = vpop.permute.xlu0 %180  ;;  %v1751_v20 = vld [vmem:[#allocation2 + $0x8] sm:$0xff]  ;;  %v183_v21 = vpop.permute.xlu1 %182  ;;  %v1758_v23 = vld [vmem:[#allocation2 + $0x20] sm:$0xff]  ;;  %v1814_v39 = vmul.f32 -0.5, %v1737_v14  ;;  %v1817_v40 = vmul.f32 -0.5, %v1739_v16  ;;  %v406_v43 = vrot.slane %v1743_v17, 1  ;;  %v542_v48 = vrot.slane %v1802_v35, 1 }
  0xbc   : > { %199 = vst.msk [vmem:[#allocation2 + $0x4a] sm:$0xff] %vm192_vm2, %v181_v19  ;;  %v1755_v22 = vmul.f32 0.16666667, %v1751_v20  ;;  %200 = vst.msk [vmem:[#allocation2 + $0x52] sm:$0xff] %vm192_vm2, %v183_v21  ;;  %v1769_v26 = vmul.f32 0.16666667, %v1758_v23 }
  0xbd   : > { %3052 = vst [vmem:[#allocation9_spill] sm:$0xff] %v1805_v36  ;;  %3053 = vst [vmem:[#allocation10_spill] sm:$0xff] %v1808_v37  ;;  %v1820_v41 = vmul.f32 0.6666667, %v1751_v20  ;;  %v1823_v42 = vmul.f32 0.6666667, %v1758_v23 }
  0xbe   : > { %247 = vrot.lane.b32.xlu1 %v1755_v22, %s1592_s25  ;;  %249 = vrot.lane.b32.xlu0 %v1749_v18, %s1592_s25  ;;  %3054 = vst [vmem:[#allocation11_spill] sm:$0xff] %v1811_v38  ;;  %v1827_v44 = vmul.f32 -0.16666667, %v1751_v20  ;;  %v1830_v45 = vmul.f32 -0.16666667, %v1758_v23  ;;  %v547_v50 = vrot.slane %v1805_v36, 1 }
  0xbf   : > { %v1764_v24 = vld [vmem:[#allocation2 + $0x30] sm:$0xff]  ;;  %v1766_v25 = vld [vmem:[#allocation2 + $0x38] sm:$0xff]  ;;  %v1833_v46 = vmul.f32 -0.083333336, %v1751_v20  ;;  %v2972_v49 = vrot.slane %v1820_v41, 1  ;;  %v2971_v51 = vrot.slane %v1823_v42, 1 }
  0xc0   : > { %v1772_v27 = vmul.f32 0.16666667, %v1764_v24  ;;  %v1779_v28 = vmul.f32 0.16666667, %v1766_v25  ;;  %v1839_v47 = vld [vmem:[#allocation2 + $0x10] sm:$0xf] }
  0xc1   : > { %3055 = vst [vmem:[#allocation12_spill] sm:$0xff] %v1833_v46  ;;  %v1846_v52 = vmul.f32 -0.083333336, %v1758_v23  ;;  %v1849_v53 = vmul.f32 -0.5, %v1751_v20  ;;  %v1852_v54 = vmul.f32 0.6666667, %v1764_v24  ;;  %v1859_v57 = vsel %vm405_vm3, %v542_v48, %v2972_v49 }
  0xc2   : > { %251 = vrot.lane.b32.xlu1 %v1769_v26, %s1592_s25  ;;  %253 = vrot.lane.b32.xlu0 %v1772_v27, %s1592_s25  ;;  %v411_v55 = vrot.slane %v1749_v18, 1  ;;  %v466_v56 = vrot.slane %v1814_v39, 1  ;;  %3057 = vst [vmem:[#allocation14_spill] sm:$0xff] %v1859_v57  ;;  %v1864_v58 = vsel %vm405_vm3, %v547_v50, %v2971_v51  ;;  %v1867_v59 = vmul.f32 0.6666667, %v1766_v25 }
  0xc3   : > { %v1781_v29 = vld [vmem:[#allocation2 + $0x48] sm:$0xff]  ;;  %v1783_v30 = vld [vmem:[#allocation2 + $0x50] sm:$0xff]  ;;  %3056 = vst [vmem:[#allocation13_spill] sm:$0xff] %v1846_v52  ;;  %3058 = vst [vmem:[#allocation15_spill] sm:$0xff] %v1864_v58  ;;  %v1870_v60 = vmul.f32 -0.5, %v1839_v47  ;;  %v1873_v61 = vmul.f32 -0.5, %v1758_v23 }
  0xc4   : > { %v1786_v31 = vmul.f32 0.16666667, %v1781_v29  ;;  %v1799_v34 = vmul.f32 0.16666667, %v1783_v30  ;;  %v552_v62 = vrot.slane %v1852_v54, 1  ;;  %v2970_v1 = vrot.slane %v1867_v59, 1 }
  0xc5   : > { %v1877_v63 = vmul.f32 0.6666667, %v1781_v29  ;;  %v1883_v0 = vld [vmem:[#allocation2 + $0x28] sm:$0xf]  ;;  %v1887_v2 = vmul.f32 0.6666667, %v1783_v30 }
  0xc6   : > { %255 = vrot.lane.b32.xlu1 %v1779_v28, %s1592_s25  ;;  %257 = vrot.lane.b32.xlu0 %v1786_v31, %s1592_s25  ;;  %3059 = vst [vmem:[#allocation16_spill] sm:$0xff] %v1883_v0  ;;  %v2969_v3 = vrot.slane %v1755_v22, 1  ;;  %v1891_v4 = vmul.f32 -0.16666667, %v1764_v24  ;;  %v1894_v5 = vmul.f32 -0.16666667, %v1766_v25  ;;  %v1904_v9 = vsel %vm405_vm3, %v552_v62, %v2970_v1 }
  0xc7   : > { %v471_v6 = vrot.slane %v1817_v40, 1  ;;  %v557_v7 = vrot.slane %v1877_v63, 1  ;;  %v1899_v8 = vmul.f32 -0.083333336, %v1764_v24  ;;  %3061 = vst [vmem:[#allocation18_spill] sm:$0xff] %v1904_v9  ;;  %v2973_v10 = vrot.slane %v1887_v2, 1 }
  0xc8   : > { %v1910_v11 = vsel %vm405_vm3, %v406_v43, %v2969_v3  ;;  %v1913_v12 = vmul.f32 -0.083333336, %v1766_v25  ;;  %v1916_v13 = vmul.f32 -0.5, %v1883_v0  ;;  %v1918_v15 = vld [vmem:[#allocation2 + $0x58] sm:$0xf]  ;;  %v2975_v19 = vrot.slane %v1769_v26, 1 }
  0xc9   : > { %3060 = vst [vmem:[#allocation17_spill] sm:$0xff] %v1899_v8  ;;  %3062 = vst [vmem:[#allocation19_spill] sm:$0xff] %v1910_v11  ;;  %v467_v21 = vrot.slane %v1849_v53, 1  ;;  %v1929_v43 = vsel %vm405_vm3, %v557_v7, %v2973_v10  ;;  %v416_v48 = vrot.slane %v1772_v27, 1  ;;  %v2976_v50 = vrot.slane %v1779_v28, 1 }
  0xca   : > { %259 = vrot.lane.b32.xlu1 %v1799_v34, %s1592_s25  ;;  %293 = vrot.lane.b32.xlu0 %v1789_v32, %s1593_s27  ;;  %3063 = vst [vmem:[#allocation20_spill] sm:$0xff] %v1913_v12  ;;  %3064 = vst [vmem:[#allocation21_spill] sm:$0xff] %v1929_v43  ;;  %v1934_v62 = vmul.f32 -0.16666667, %v1781_v29  ;;  %v469_v3 = vrot.slane %v1870_v60, 1  ;;  %v472_v1 = vrot.slane %v1873_v61, 1  ;;  %v1941_v51 = vsel %vm405_vm3, %v411_v55, %v2975_v19 }
  0xcb   : > { %3065 = vst [vmem:[#allocation22_spill] sm:$0xff] %v1941_v51  ;;  %v1943_v49 = vld [vmem:[#allocation2 + $0x40] sm:$0xf]  ;;  %v1948_v7 = vsel %vm405_vm3, %v416_v48, %v2976_v50  ;;  %v421_v10 = vrot.slane %v1786_v31, 1  ;;  %v422_v11 = vrot.slane %v1799_v34, 1  ;;  %v474_v9 = vrot.slane %v1916_v13, 1 }
  0xcc   : > { %3066 = vst [vmem:[#allocation23_spill] sm:$0xff] %v1943_v49  ;;  %3067 = vst [vmem:[#allocation24_spill] sm:$0xff] %v1948_v7  ;;  %v1953_v43 = vmul.f32 0.16666667, %v1918_v15  ;;  %v1957_v58 = vmul.f32 -0.5, %v1764_v24  ;;  %v703_v55 = vrot.slane %v1802_v35, 2  ;;  %v1974_v57 = vsel %vm405_vm3, %v466_v56, %v467_v21 }
  0xcd   : > { %v1966_v48 = vmul.f32 -0.5, %v1766_v25  ;;  %v1969_v50 = vsel %vm405_vm3, %v421_v10, %v422_v11  ;;  %v708_v51 = vrot.slane %v1805_v36, 2  ;;  %3070 = vst [vmem:[#allocation27_spill] sm:$0xff] %v1974_v57  ;;  %v1977_v19 = vmul.f32 -0.5, %v1943_v49 }
  0xce   : > { %295 = vrot.lane.b32.xlu1 %v1827_v44, %s1593_s27  ;;  %297 = vrot.lane.b32.xlu0 %v1792_v33, %s1593_s27  ;;  %3068 = vst [vmem:[#allocation25_spill] sm:$0xff] %v1953_v43  ;;  %3069 = vst [vmem:[#allocation26_spill] sm:$0xff] %v1969_v50  ;;  %v424_v7 = vrot.slane %v1953_v43, 1  ;;  %v3071_v12 = vrot.slane %v1820_v41, 2  ;;  %v2987_v52 = vrot.slane %v1823_v42, 2  ;;  %v713_v43 = vrot.slane %v1852_v54, 2 }
  0xcf   : > { %v1986_v10 = vmul.f32 -0.16666667, %v1783_v30  ;;  %v2991_v56 = vrot.slane %v1867_v59, 2  ;;  %v1994_v57 = vmul.f32 -0.083333336, %v1781_v29 }
  0xd0   : > { %v1982_v8 = vsel %vm666_vm4, %v703_v55, %v3071_v12  ;;  %v1989_v50 = vsel %vm405_vm3, %v422_v11, %v424_v7  ;;  %v1997_v36 = vmul.f32 -0.083333336, %v1783_v30  ;;  %v2002_v12 = vsel %vm666_vm4, %v708_v51, %v2987_v52 }
  0xd1   : > { %3072 = vst [vmem:[#allocation28_spill] sm:$0xff] %v1982_v8  ;;  %3073 = vst [vmem:[#allocation29_spill] sm:$0xff] %v1989_v50  ;;  %v718_v55 = vrot.slane %v1877_v63, 2  ;;  %v2010_v11 = vsel %vm405_vm3, %v467_v21, %v469_v3  ;;  %v2015_v7 = vsel %vm666_vm4, %v713_v43, %v2991_v56  ;;  %v2992_v51 = vrot.slane %v1887_v2, 2 }
  0xd2   : > { %299 = vrot.lane.b32.xlu1 %v1830_v45, %s1593_s27  ;;  %301 = vrot.lane.b32.xlu0 %v1891_v4, %s1593_s27  ;;  %3074 = vst [vmem:[#allocation30_spill] sm:$0xff] %v1994_v57  ;;  %3075 = vst [vmem:[#allocation31_spill] sm:$0xff] %v2002_v12  ;;  %v755_v52 = vmul.f32 -1.0, %v1737_v14  ;;  %v2020_v12 = vsel %vm405_vm3, %v471_v6, %v472_v1  ;;  %v2023_v8 = vsel %vm405_vm3, %v472_v1, %v474_v9 }
  0xd3   : > { %3076 = vst [vmem:[#allocation32_spill] sm:$0xff] %v2015_v7  ;;  %3077 = vst [vmem:[#allocation33_spill] sm:$0xff] %v2023_v8  ;;  %v2026_v50 = vmul.f32 -1.0, %v1751_v20  ;;  %v758_v3 = vmul.f32 -1.0, %v1739_v16  ;;  %v476_v21 = vrot.slane %v1957_v58, 1  ;;  %v2034_v56 = vsel %vm666_vm4, %v718_v55, %v2992_v51 }
  0xd4   : > { %3079 = vst [vmem:[#allocation35_spill] sm:$0xff] %v2034_v56  ;;  %v2037_v14 = vmul.f32 -1.0, %v1758_v23  ;;  %v779_v6 = vrot.slane %v755_v52, 2  ;;  %v2046_v16 = vmul.f32 -0.5, %v1781_v29  ;;  %v761_v23 = vmul.f32 -1.0, %v1764_v24 }
  0xd5   : > { %3078 = vst [vmem:[#allocation34_spill] sm:$0xff] %v2026_v50  ;;  %v2997_v20 = vrot.slane %v2026_v50, 2  ;;  %v784_v9 = vrot.slane %v758_v3, 2  ;;  %v2051_v51 = vmul.f32 -1.0, %v1766_v25  ;;  %v2054_v52 = vmul.f32 -0.5, %v1783_v30 }
  0xd6   : > { %303 = vrot.lane.b32.xlu1 %v1894_v5, %s1593_s27  ;;  %305 = vrot.lane.b32.xlu0 %v1934_v62, %s1593_s27  ;;  %3080 = vst [vmem:[#allocation36_spill] sm:$0xff] %v2037_v14  ;;  %v2057_v3 = vmul.f32 -0.5, %v1918_v15  ;;  %v764_v43 = vmul.f32 -1.0, %v1781_v29  ;;  %v3083_v55 = vrot.slane %v1966_v48, 1  ;;  %v3085_v25 = vrot.slane %v2037_v14, 2 }
  0xd7   : > { %3081 = vst [vmem:[#allocation37_spill] sm:$0xff] %v2051_v51  ;;  %v2062_v1 = vsel %vm666_vm4, %v779_v6, %v2997_v20  ;;  %v789_v7 = vrot.slane %v761_v23, 2  ;;  %v2999_v8 = vrot.slane %v2051_v51, 2  ;;  %v2077_v50 = vmul.f32 0.6666667, %v1839_v47 }
  0xd8   : > { %3082 = vst [vmem:[#allocation38_spill] sm:$0xff] %v2062_v1  ;;  %v2068_v24 = vsel %vm405_vm3, %v476_v21, %v3083_v55  ;;  %v2073_v56 = vsel %vm666_vm4, %v784_v9, %v3085_v25  ;;  %v765_v6 = vmul.f32 -1.0, %v1783_v30  ;;  %v794_v29 = vrot.slane %v764_v43, 2 }
  0xd9   : > { %3084 = vst [vmem:[#allocation39_spill] sm:$0xff] %v2068_v24  ;;  %3086 = vst [vmem:[#allocation40_spill] sm:$0xff] %v2073_v56  ;;  %v766_v20 = vmul.f32 -1.0, %v1918_v15  ;;  %v2089_v9 = vsel %vm666_vm4, %v789_v7, %v2999_v8  ;;  %v667_v55 = vrot.slane %v1789_v32, 2  ;;  %v3001_v30 = vrot.slane %v1827_v44, 2 }
  0xda   : > { %307 = vrot.lane.b32.xlu1 %v1986_v10, %s1593_s27  ;;  %325 = vrot.lane.b32.xlu0 %v1743_v17, %s1594_s28  ;;  %3087 = vst [vmem:[#allocation41_spill] sm:$0xff] %v2089_v9  ;;  %v2094_v43 = vmul.f32 0.6666667, %v1883_v0  ;;  %v795_v23 = vrot.slane %v765_v6, 2  ;;  %v672_v14 = vrot.slane %v1792_v33, 2  ;;  %v3003_v7 = vrot.slane %v1830_v45, 2 }
  0xdb   : > { %v797_v25 = vrot.slane %v766_v20, 2  ;;  %v2098_v56 = vmul.f32 0.6666667, %v1943_v49  ;;  %v2103_v21 = vsel %vm666_vm4, %v667_v55, %v3001_v30  ;;  %v677_v8 = vrot.slane %v1891_v4, 2 }
  0xdc   : > { %3088 = vst [vmem:[#allocation42_spill] sm:$0xff] %v2103_v21  ;;  %v2108_v51 = vmul.f32 0.6666667, %v1918_v15  ;;  %v2111_v6 = vsel %vm666_vm4, %v794_v29, %v795_v23  ;;  %v3006_v9 = vrot.slane %v1894_v5, 2  ;;  %v2122_v55 = vmul.f32 0.16666667, %v1839_v47 }
  0xdd   : > { %3089 = vst [vmem:[#allocation43_spill] sm:$0xff] %v2111_v6  ;;  %v2114_v20 = vsel %vm666_vm4, %v795_v23, %v797_v25  ;;  %v2125_v30 = vmul.f32 0.16666667, %v1883_v0  ;;  %v2130_v29 = vsel %vm666_vm4, %v672_v14, %v3003_v7  ;;  %v682_v23 = vrot.slane %v1934_v62, 2 }
  0xde   : > { %327 = vrot.lane.b32.xlu1 %v1755_v22, %s1594_s28  ;;  %329 = vrot.lane.b32.xlu0 %v1749_v18, %s1594_s28  ;;  %3090 = vst [vmem:[#allocation44_spill] sm:$0xff] %v2114_v20  ;;  %3091 = vst [vmem:[#allocation45_spill] sm:$0xff] %v2130_v29  ;;  %v2134_v25 = vmul.f32 0.16666667, %v1943_v49  ;;  %v2139_v21 = vsel %vm666_vm4, %v677_v8, %v3006_v9  ;;  %v683_v20 = vrot.slane %v1986_v10, 2  ;;  %v932_v7 = vrot.slane %v1814_v39, 3 }
  0xdf   : > { %3092 = vst [vmem:[#allocation46_spill] sm:$0xff] %v2139_v21  ;;  %v2143_v6 = vmul.f32 -0.16666667, %v1918_v15  ;;  %v2146_v1 = vmul.f32 -0.16666667, %v1839_v47  ;;  %v933_v29 = vrot.slane %v1849_v53, 3 }
  0xe0   : > { %v2149_v14 = vmul.f32 -0.16666667, %v1883_v0  ;;  %v2154_v24 = vsel %vm666_vm4, %v682_v23, %v683_v20  ;;  %v935_v9 = vrot.slane %v1870_v60, 3  ;;  %v937_v21 = vrot.slane %v1817_v40, 3 }
  0xe1   : > { %3093 = vst [vmem:[#allocation47_spill] sm:$0xff] %v2154_v24  ;;  %v685_v8 = vrot.slane %v2143_v6, 2  ;;  %v2164_v39 = vmul.f32 -0.16666667, %v1943_v49  ;;  %v2167_v53 = vsel %vm895_vm5, %v932_v7, %v933_v29  ;;  %v938_v23 = vrot.slane %v1873_v61, 3 }
  0xe2   : > { %331 = vrot.lane.b32.xlu1 %v1769_v26, %s1594_s28  ;;  %333 = vrot.lane.b32.xlu0 %v1772_v27, %s1594_s28  ;;  %v940_v24 = vrot.slane %v1916_v13, 3  ;;  %v2175_v40 = vsel %vm895_vm5, %v933_v29, %v935_v9  ;;  %v942_v0 = vrot.slane %v1957_v58, 3  ;;  %v945_v61 = vrot.slane %v1977_v19, 3 }
  0xe3   : > { %v2172_v60 = vsel %vm666_vm4, %v683_v20, %v685_v8  ;;  %v2180_v49 = vsel %vm895_vm5, %v937_v21, %v938_v23  ;;  %v947_v13 = vrot.slane %v2046_v16, 3  ;;  %v948_v9 = vrot.slane %v2054_v52, 3  ;;  %v3098_v8 = vld [vmem:[#allocation9_spill] sm:$0xff] }
  0xe4   : > { %3094 = vst [vmem:[#allocation48_spill] sm:$0xff] %v2172_v60  ;;  %v2183_v7 = vsel %vm895_vm5, %v938_v23, %v940_v24  ;;  %v950_v29 = vrot.slane %v2057_v3, 3  ;;  %v984_v58 = vrot.slane %v1802_v35, 3  ;;  %v985_v21 = vrot.slane %v1820_v41, 3 }
  0xe5   : > { %3095 = vst [vmem:[#allocation49_spill] sm:$0xff] %v2183_v7  ;;  %v989_v23 = vrot.slane %v3098_v8, 3  ;;  %v992_v7 = vrot.slane %v2094_v43, 3  ;;  %v995_v8 = vrot.slane %v1867_v59, 3 }
  0xe6   : > { %335 = vrot.lane.b32.xlu1 %v1779_v28, %s1594_s28  ;;  %337 = vrot.lane.b32.xlu0 %v1786_v31, %s1594_s28  ;;  %v2207_v35 = vsel %vm895_vm5, %v948_v9, %v950_v29  ;;  %v997_v29 = vrot.slane %v2098_v56, 3 }
  0xe7   : > { %3100 = vst [vmem:[#allocation52_spill] sm:$0xff] %v2207_v35  ;;  %v999_v35 = vrot.slane %v1877_v63, 3  ;;  %v897_v63 = vrot.slane %v1755_v22, 3 }
  0xea   : > { %339 = vrot.lane.b32.xlu1 %v1799_v34, %s1594_s28  ;;  %365 = vrot.lane.b32.xlu0 %v1808_v37, %s1595_s29  ;;  %v943_v37 = vrot.slane %v1966_v48, 3 }
  0xec   : > { %v2188_v20 = vsel %vm895_vm5, %v942_v0, %v943_v37  ;;  %v2198_v24 = vsel %vm895_vm5, %v943_v37, %v945_v61  ;;  %v987_v0 = vrot.slane %v2077_v50, 3  ;;  %v2212_v37 = vsel %vm895_vm5, %v984_v58, %v985_v21  ;;  %v3104_v58 = vld [vmem:[#allocation13_spill] sm:$0xff] }
  0xed   : > { %3096 = vst [vmem:[#allocation50_spill] sm:$0xff] %v2188_v20  ;;  %3097 = vst [vmem:[#allocation51_spill] sm:$0xff] %v2198_v24  ;;  %v2204_v20 = vsel %vm895_vm5, %v947_v13, %v948_v9 }
  0xee   : > { %367 = vrot.lane.b32.xlu1 %v1833_v46, %s1595_s29  ;;  %369 = vrot.lane.b32.xlu0 %v1811_v38, %s1595_s29  ;;  %3099 = vst [vmem:[#allocation9_spill] sm:$0xff] %v2204_v20  ;;  %v990_v46 = vrot.slane %v1823_v42, 3  ;;  %v2215_v61 = vsel %vm895_vm5, %v985_v21, %v987_v0  ;;  %v994_v38 = vrot.slane %v1852_v54, 3  ;;  %v3105_v21 = vld [vmem:[#allocation17_spill] sm:$0xff]  ;;  %v1000_v0 = vrot.slane %v1887_v2, 3 }
  0xef   : > { %3101 = vst [vmem:[#allocation53_spill] sm:$0xff] %v2215_v61 }
  0xf0   : > { %v2220_v13 = vsel %vm895_vm5, %v989_v23, %v990_v46  ;;  %v2223_v9 = vsel %vm895_vm5, %v990_v46, %v992_v7  ;;  %v2232_v54 = vsel %vm895_vm5, %v994_v38, %v995_v8  ;;  %v1002_v23 = vrot.slane %v2108_v51, 3 }
  0xf1   : > { %3102 = vst [vmem:[#allocation54_spill] sm:$0xff] %v2220_v13  ;;  %3103 = vst [vmem:[#allocation55_spill] sm:$0xff] %v2223_v9  ;;  %v896_v46 = vrot.slane %v1743_v17, 3  ;;  %v2238_v7 = vsel %vm895_vm5, %v995_v8, %v997_v29  ;;  %v899_v9 = vrot.slane %v2122_v55, 3  ;;  %v904_v13 = vrot.slane %v2125_v30, 3 }
  0xf2   : > { %371 = vrot.lane.b32.xlu1 %v3104_v58, %s1595_s29  ;;  %373 = vrot.lane.b32.xlu0 %v3105_v21, %s1595_s29  ;;  %3106 = vst [vmem:[#allocation56_spill] sm:$0xff] %v2232_v54  ;;  %3107 = vst [vmem:[#allocation57_spill] sm:$0xff] %v2238_v7  ;;  %v901_v58 = vrot.slane %v1749_v18, 3  ;;  %v2244_v21 = vsel %vm895_vm5, %v999_v35, %v1000_v0  ;;  %v2247_v38 = vsel %vm895_vm5, %v1000_v0, %v1002_v23  ;;  %v3112_v35 = vld [vmem:[#allocation20_spill] sm:$0xff] }
  0xf3   : > { %3108 = vst [vmem:[#allocation58_spill] sm:$0xff] %v2244_v21  ;;  %3109 = vst [vmem:[#allocation59_spill] sm:$0xff] %v2247_v38  ;;  %v902_v54 = vrot.slane %v1769_v26, 3  ;;  %v2252_v61 = vsel %vm895_vm5, %v896_v46, %v897_v63  ;;  %v2255_v8 = vsel %vm895_vm5, %v897_v63, %v899_v9  ;;  %v906_v29 = vrot.slane %v1772_v27, 3 }
  0xf4   : > { %3110 = vst [vmem:[#allocation60_spill] sm:$0xff] %v2252_v61  ;;  %3111 = vst [vmem:[#allocation61_spill] sm:$0xff] %v2255_v8  ;;  %v907_v7 = vrot.slane %v1779_v28, 3  ;;  %v909_v46 = vrot.slane %v2134_v25, 3  ;;  %v911_v9 = vrot.slane %v1786_v31, 3  ;;  %v912_v8 = vrot.slane %v1799_v34, 3 }
  0xf5   : > { %v2264_v0 = vsel %vm895_vm5, %v901_v58, %v902_v54  ;;  %v2267_v23 = vsel %vm895_vm5, %v902_v54, %v904_v13  ;;  %v3116_v61 = vld [vmem:[#allocation25_spill] sm:$0xff]  ;;  %v1145_v21 = vrot.slane %v1743_v17, 4  ;;  %v1146_v58 = vrot.slane %v1755_v22, 4  ;;  %v3120_v17 = vld [vmem:[#allocation27_spill] sm:$0xff] }
  0xf6   : > { %375 = vrot.lane.b32.xlu1 %v3112_v35, %s1595_s29  ;;  %377 = vrot.lane.b32.xlu0 %v1994_v57, %s1595_s29  ;;  %3113 = vst [vmem:[#allocation20_spill] sm:$0xff] %v2264_v0  ;;  %3114 = vst [vmem:[#allocation62_spill] sm:$0xff] %v2267_v23  ;;  %v2272_v63 = vsel %vm895_vm5, %v906_v29, %v907_v7  ;;  %v914_v38 = vrot.slane %v3116_v61, 3  ;;  %v2278_v57 = vsel %vm895_vm5, %v907_v7, %v909_v46 }
  0xf7   : > { %3115 = vst [vmem:[#allocation63_spill] sm:$0xff] %v2272_v63  ;;  %3117 = vst [vmem:[#allocation25_spill] sm:$0xff] %v2278_v57  ;;  %v1148_v13 = vrot.slane %v2122_v55, 4  ;;  %v1150_v54 = vrot.slane %v1749_v18, 4  ;;  %v2284_v23 = vsel %vm895_vm5, %v911_v9, %v912_v8  ;;  %v1151_v63 = vrot.slane %v1769_v26, 4 }
  0xf8   : > { %3118 = vst [vmem:[#allocation64_spill] sm:$0xff] %v2284_v23  ;;  %v2287_v29 = vsel %vm895_vm5, %v912_v8, %v914_v38  ;;  %v1153_v0 = vrot.slane %v2125_v30, 4  ;;  %v2296_v7 = vsel %vm1108_vm6, %v1145_v21, %v1146_v58  ;;  %v1155_v46 = vrot.slane %v1772_v27, 4 }
  0xf9   : > { %3119 = vst [vmem:[#allocation65_spill] sm:$0xff] %v2287_v29  ;;  %3121 = vst [vmem:[#allocation27_spill] sm:$0xff] %v2296_v7  ;;  %v2299_v18 = vsel %vm1108_vm6, %v1146_v58, %v1148_v13  ;;  %v1156_v38 = vrot.slane %v1779_v28, 4  ;;  %v2304_v8 = vsel %vm1108_vm6, %v1150_v54, %v1151_v63  ;;  %v1158_v29 = vrot.slane %v2134_v25, 4 }
  0xfa   : > { %379 = vrot.lane.b32.xlu1 %v1997_v36, %s1595_s29  ;;  %486 = vrot.lane.b32.xlu0 %v3120_v17, %s1592_s25  ;;  %3122 = vst [vmem:[#allocation66_spill] sm:$0xff] %v2299_v18  ;;  %3123 = vst [vmem:[#allocation67_spill] sm:$0xff] %v2304_v8  ;;  %v2307_v9 = vsel %vm1108_vm6, %v1151_v63, %v1153_v0  ;;  %v1160_v23 = vrot.slane %v1786_v31, 4  ;;  %v1161_v58 = vrot.slane %v1799_v34, 4  ;;  %v1163_v13 = vrot.slane %v3116_v61, 4 }
  0xfb   : > { %3124 = vst [vmem:[#allocation68_spill] sm:$0xff] %v2307_v9  ;;  %v2312_v21 = vsel %vm1108_vm6, %v1155_v46, %v1156_v38  ;;  %v1197_v27 = vrot.slane %v1789_v32, 4  ;;  %v2318_v18 = vsel %vm1108_vm6, %v1156_v38, %v1158_v29  ;;  %v1198_v54 = vrot.slane %v1827_v44, 4 }
  0xfc   : > { %3125 = vst [vmem:[#allocation69_spill] sm:$0xff] %v2312_v21  ;;  %3126 = vst [vmem:[#allocation70_spill] sm:$0xff] %v2318_v18  ;;  %v1200_v0 = vrot.slane %v2146_v1, 4  ;;  %v1202_v63 = vrot.slane %v1792_v33, 4  ;;  %v2328_v31 = vsel %vm1108_vm6, %v1160_v23, %v1161_v58  ;;  %v2331_v32 = vsel %vm1108_vm6, %v1161_v58, %v1163_v13 }
  0xfd   : > { %3127 = vst [vmem:[#allocation71_spill] sm:$0xff] %v2328_v31  ;;  %3128 = vst [vmem:[#allocation72_spill] sm:$0xff] %v2331_v32  ;;  %v1203_v34 = vrot.slane %v1830_v45, 4  ;;  %v1205_v61 = vrot.slane %v2149_v14, 4  ;;  %v2336_v29 = vsel %vm1108_vm6, %v1197_v27, %v1198_v54  ;;  %v1207_v46 = vrot.slane %v1891_v4, 4 }
  0xfe   : > { %488 = vrot.lane.b32.xlu1 %v2010_v11, %s1592_s25  ;;  %490 = vrot.lane.b32.xlu0 %v2020_v12, %s1592_s25  ;;  %3129 = vst [vmem:[#allocation73_spill] sm:$0xff] %v2336_v29  ;;  %v2339_v33 = vsel %vm1108_vm6, %v1198_v54, %v1200_v0  ;;  %v1208_v38 = vrot.slane %v1894_v5, 4  ;;  %v1210_v13 = vrot.slane %v2164_v39, 4  ;;  %v1212_v32 = vrot.slane %v1934_v62, 4  ;;  %v3134_v0 = vld [vmem:[#allocation33_spill] sm:$0xff] }
  0xff   : > { %3130 = vst [vmem:[#allocation74_spill] sm:$0xff] %v2339_v33  ;;  %v2344_v23 = vsel %vm1108_vm6, %v1202_v63, %v1203_v34  ;;  %v2347_v58 = vsel %vm1108_vm6, %v1203_v34, %v1205_v61  ;;  %v482_v27 = vrot.slane %v2054_v52, 1  ;;  %v1213_v54 = vrot.slane %v1986_v10, 4  ;;  %v3135_v63 = vld [vmem:[#allocation39_spill] sm:$0xff]  ;;  %v3170_v33 = vld [vmem:[#allocation34_spill] sm:$0xff] }
 0x100   : > { %3131 = vst [vmem:[#allocation75_spill] sm:$0xff] %v2344_v23  ;;  %3132 = vst [vmem:[#allocation76_spill] sm:$0xff] %v2347_v58  ;;  %v2353_v29 = vsel %vm1108_vm6, %v1207_v46, %v1208_v38  ;;  %v1215_v4 = vrot.slane %v2143_v6, 4  ;;  %v2362_v34 = vsel %vm1108_vm6, %v1208_v38, %v1210_v13  ;;  %v3139_v61 = vrot.slane %v1977_v19, 1  ;;  %v3168_v23 = vld [vmem:[#allocation16_spill] sm:$0xff] }
 0x101   : > { %3133 = vst [vmem:[#allocation77_spill] sm:$0xff] %v2353_v29  ;;  %3136 = vst [vmem:[#allocation33_spill] sm:$0xff] %v2362_v34  ;;  %v2365_v62 = vsel %vm1108_vm6, %v1212_v32, %v1213_v54  ;;  %v3140_v10 = vrot.slane %v1966_v48, 1  ;;  %v3141_v46 = vrot.slane %v2046_v16, 1  ;;  %v484_v58 = vrot.slane %v2057_v3, 1  ;;  %v3142_v16 = vld [vmem:[#allocation14_spill] sm:$0xff] }
 0x102   : > { %492 = vrot.lane.b32.xlu1 %v3134_v0, %s1592_s25  ;;  %494 = vrot.lane.b32.xlu0 %v3135_v63, %s1592_s25  ;;  %3137 = vst [vmem:[#allocation39_spill] sm:$0xff] %v2365_v62  ;;  %v2368_v52 = vsel %vm1108_vm6, %v1213_v54, %v1215_v4  ;;  %v3031_v32 = vrot.slane %v1997_v36, 4  ;;  %v1103_v38 = vmul.f32 -0.083333336, %v1918_v15  ;;  %v545_v48 = vrot.slane %v2077_v50, 1 }
 0x103   : > { %3138 = vst [vmem:[#allocation78_spill] sm:$0xff] %v2368_v52  ;;  %v480_v6 = vsel %vm405_vm3, %v3140_v10, %v3139_v61  ;;  %v483_v29 = vsel %vm405_vm3, %v3141_v46, %v482_v27  ;;  %v485_v19 = vsel %vm405_vm3, %v482_v27, %v484_v58  ;;  %v3144_v54 = vrot.slane %v1820_v41, 1  ;;  %v3145_v58 = vld [vmem:[#allocation15_spill] sm:$0xff]  ;;  %v3147_v46 = vld [vmem:[#allocation18_spill] sm:$0xff] }
 0x104   : > { %v1127_v13 = vrot.slane %v1103_v38, 4  ;;  %v550_v15 = vrot.slane %v2094_v43, 1  ;;  %v3146_v27 = vrot.slane %v1823_v42, 1  ;;  %v555_v10 = vrot.slane %v2098_v56, 1 }
 0x105   : > { %v546_v4 = vsel %vm405_vm3, %v3144_v54, %v545_v48  ;;  %v3148_v38 = vrot.slane %v1867_v59, 1  ;;  %v560_v48 = vrot.slane %v2108_v51, 1  ;;  %v3150_v54 = vrot.slane %v1887_v2, 1 }
 0x106   : > { %496 = vrot.lane.b32.xlu1 %v480_v6, %s1592_s25  ;;  %498 = vrot.lane.b32.xlu0 %v483_v29, %s1592_s25  ;;  %v2391_v3 = vsel %vm1108_vm6, %v3031_v32, %v1127_v13  ;;  %v551_v61 = vsel %vm405_vm3, %v3146_v27, %v550_v15  ;;  %v409_v15 = vrot.slane %v2122_v55, 1  ;;  %v716_v32 = vrot.slane %v2098_v56, 2  ;;  %v3166_v56 = vld [vmem:[#allocation35_spill] sm:$0xff] }
 0x107   : > { %3143 = vst [vmem:[#allocation14_spill] sm:$0xff] %v2391_v3  ;;  %v556_v13 = vsel %vm405_vm3, %v3148_v38, %v555_v10  ;;  %v3156_v10 = vrot.slane %v1779_v28, 1  ;;  %v3160_v28 = vld [vmem:[#allocation28_spill] sm:$0xff]  ;;  %v721_v52 = vrot.slane %v2108_v51, 2  ;;  %v3167_v62 = vrot.slane %v1887_v2, 2  ;;  %v3172_v2 = vld [vmem:[#allocation23_spill] sm:$0xff] }
 0x108   : > { %v3171_v31 = vrot.slane %v3170_v33, 2  ;;  %v763_v9 = vmul.f32 -1.0, %v3172_v2  ;;  %v3185_v57 = vrot.slane %v1830_v45, 2  ;;  %v3190_v45 = vld [vmem:[#allocation47_spill] sm:$0xff] }
 0x109   : > { %v722_v34 = vsel %vm666_vm4, %v3167_v62, %v721_v52 }
 0x10a   : > { %500 = vrot.lane.b32.xlu1 %v485_v19, %s1592_s25  ;;  %562 = vrot.lane.b32.xlu0 %v3142_v16, %s1593_s27  ;;  %v3149_v16 = vld [vmem:[#allocation21_spill] sm:$0xff]  ;;  %v792_v7 = vrot.slane %v763_v9, 2 }
 0x10e   : > { %564 = vrot.lane.b32.xlu1 %v546_v4, %s1593_s27  ;;  %566 = vrot.lane.b32.xlu0 %v3145_v58, %s1593_s27  ;;  %v561_v4 = vsel %vm405_vm3, %v3150_v54, %v560_v48  ;;  %v3159_v48 = vld [vmem:[#allocation29_spill] sm:$0xff] }
 0x112   : > { %568 = vrot.lane.b32.xlu1 %v551_v61, %s1593_s27  ;;  %570 = vrot.lane.b32.xlu0 %v3147_v46, %s1593_s27 }
 0x116   : > { %572 = vrot.lane.b32.xlu1 %v556_v13, %s1593_s27  ;;  %574 = vrot.lane.b32.xlu0 %v3149_v16, %s1593_s27  ;;  %v706_v13 = vrot.slane %v2077_v50, 2  ;;  %v3162_v50 = vld [vmem:[#allocation31_spill] sm:$0xff] }
 0x11a   : > { %576 = vrot.lane.b32.xlu1 %v561_v4, %s1593_s27  ;;  %594 = vrot.lane.b32.xlu0 %v3120_v17, %s1594_s28  ;;  %v3151_v17 = vld [vmem:[#allocation19_spill] sm:$0xff]  ;;  %v3161_v4 = vrot.slane %v1820_v41, 2  ;;  %v3164_v41 = vld [vmem:[#allocation32_spill] sm:$0xff] }
 0x11e   : > { %596 = vrot.lane.b32.xlu1 %v2010_v11, %s1594_s28  ;;  %598 = vrot.lane.b32.xlu0 %v2020_v12, %s1594_s28  ;;  %v3152_v12 = vrot.slane %v1755_v22, 1  ;;  %v419_v22 = vrot.slane %v2134_v25, 1 }
 0x120   : > { %v2467_v46 = vsel %vm405_vm3, %v3156_v10, %v419_v22  ;;  %v3163_v22 = vrot.slane %v1823_v42, 2  ;;  %v757_v42 = vmul.f32 -1.0, %v1839_v47  ;;  %v3169_v47 = vld [vmem:[#allocation38_spill] sm:$0xff] }
 0x121   : > { %3157 = vst [vmem:[#allocation15_spill] sm:$0xff] %v2467_v46 }
 0x122   : > { %600 = vrot.lane.b32.xlu1 %v3134_v0, %s1594_s28  ;;  %602 = vrot.lane.b32.xlu0 %v3135_v63, %s1594_s28  ;;  %v2439_v0 = vsel %vm405_vm3, %v3152_v12, %v409_v15  ;;  %v414_v63 = vrot.slane %v2125_v30, 1  ;;  %v3155_v30 = vld [vmem:[#allocation24_spill] sm:$0xff]  ;;  %v707_v15 = vsel %vm666_vm4, %v3161_v4, %v706_v13  ;;  %v711_v12 = vrot.slane %v2094_v43, 2 }
 0x123   : > { %v3165_v4 = vrot.slane %v1867_v59, 2  ;;  %v782_v59 = vrot.slane %v757_v42, 2  ;;  %v3174_v42 = vld [vmem:[#allocation36_spill] sm:$0xff] }
 0x124   : > { %v712_v10 = vsel %vm666_vm4, %v3163_v22, %v711_v12 }
 0x125   : > { %v717_v3 = vsel %vm666_vm4, %v3165_v4, %v716_v32  ;;  %v760_v32 = vmul.f32 -1.0, %v3168_v23  ;;  %v783_v18 = vsel %vm666_vm4, %v3171_v31, %v782_v59  ;;  %v3173_v23 = vld [vmem:[#allocation40_spill] sm:$0xff]  ;;  %v3176_v31 = vld [vmem:[#allocation41_spill] sm:$0xff] }
 0x126   : > { %604 = vrot.lane.b32.xlu1 %v480_v6, %s1594_s28  ;;  %606 = vrot.lane.b32.xlu0 %v483_v29, %s1594_s28  ;;  %v3153_v29 = vld [vmem:[#allocation22_spill] sm:$0xff]  ;;  %v3177_v59 = vld [vmem:[#allocation37_spill] sm:$0xff] }
 0x127   : > { %v787_v21 = vrot.slane %v760_v32, 2  ;;  %v3178_v32 = vrot.slane %v3177_v59, 2 }
 0x129   : > { %v793_v2 = vsel %vm666_vm4, %v3178_v32, %v792_v7  ;;  %v670_v32 = vrot.slane %v2146_v1, 2  ;;  %v3184_v1 = vld [vmem:[#allocation45_spill] sm:$0xff] }
 0x12a   : > { %608 = vrot.lane.b32.xlu1 %v485_v19, %s1594_s28  ;;  %626 = vrot.lane.b32.xlu0 %v3151_v17, %s1595_s29  ;;  %v3154_v19 = vrot.slane %v1769_v26, 1  ;;  %v3158_v26 = vld [vmem:[#allocation26_spill] sm:$0xff] }
 0x12c   : > { %v2434_v11 = vpop.permute.xlu0 %245  ;;  %v2453_v58 = vsel %vm405_vm3, %v3154_v19, %v414_v63 }
 0x12e   : > { %628 = vrot.lane.b32.xlu1 %v2439_v0, %s1595_s29  ;;  %630 = vrot.lane.b32.xlu0 %v3153_v29, %s1595_s29 }
 0x130   : > { %v2446_v55 = vpop.permute.xlu1 %247  ;;  %v2448_v6 = vpop.permute.xlu0 %249 }
 0x132   : > { %632 = vrot.lane.b32.xlu1 %v2453_v58, %s1595_s29  ;;  %634 = vrot.lane.b32.xlu0 %v3155_v30, %s1595_s29 }
 0x134   : > { %v2460_v27 = vpop.permute.xlu1 %251  ;;  %v2462_v61 = vpop.permute.xlu0 %253 }
 0x136   : > { %636 = vrot.lane.b32.xlu1 %v2467_v46, %s1595_s29  ;;  %638 = vrot.lane.b32.xlu0 %v3158_v26, %s1595_s29 }
 0x138   : > { %v2473_v25 = vpop.permute.xlu1 %255  ;;  %v2475_v38 = vpop.permute.xlu0 %257 }
 0x13a   : > { %640 = vrot.lane.b32.xlu1 %v3159_v48, %s1595_s29  ;;  %723 = vrot.lane.b32.xlu0 %v3160_v28, %s1592_s25 }
 0x13c   : > { %v2482_v16 = vpop.permute.xlu1 %259  ;;  %v2484_v54 = vpop.permute.xlu0 %293 }
 0x13e   : > { %725 = vrot.lane.b32.xlu1 %v707_v15, %s1592_s25  ;;  %727 = vrot.lane.b32.xlu0 %v3162_v50, %s1592_s25 }
 0x140   : > { %v2493_v63 = vpop.permute.xlu1 %295  ;;  %v2495_v19 = vpop.permute.xlu0 %297 }
 0x142   : > { %729 = vrot.lane.b32.xlu1 %v712_v10, %s1592_s25  ;;  %731 = vrot.lane.b32.xlu0 %v3164_v41, %s1592_s25 }
 0x144   : > { %v2504_v43 = vpop.permute.xlu1 %299  ;;  %v2506_v13 = vpop.permute.xlu0 %301 }
 0x146   : > { %733 = vrot.lane.b32.xlu1 %v717_v3, %s1592_s25  ;;  %735 = vrot.lane.b32.xlu0 %v3166_v56, %s1592_s25 }
 0x148   : > { %v2516_v12 = vpop.permute.xlu1 %303  ;;  %v2518_v22 = vpop.permute.xlu0 %305 }
 0x14a   : > { %737 = vrot.lane.b32.xlu1 %v722_v34, %s1592_s25  ;;  %799 = vrot.lane.b32.xlu0 %v3169_v47, %s1593_s27  ;;  %v3175_v47 = vrot.slane %v3174_v42, 2 }
 0x14c   : > { %v2527_v51 = vpop.permute.xlu1 %307  ;;  %v2529_v4 = vpop.permute.xlu0 %325  ;;  %v788_v8 = vsel %vm666_vm4, %v3175_v47, %v787_v21 }
 0x14e   : > { %801 = vrot.lane.b32.xlu1 %v783_v18, %s1593_s27  ;;  %803 = vrot.lane.b32.xlu0 %v3173_v23, %s1593_s27  ;;  %v3179_v23 = vld [vmem:[#allocation43_spill] sm:$0xff] }
 0x150   : > { %v2538_v62 = vpop.permute.xlu1 %327  ;;  %v2540_v52 = vpop.permute.xlu0 %329 }
 0x152   : > { %805 = vrot.lane.b32.xlu1 %v788_v8, %s1593_s27  ;;  %807 = vrot.lane.b32.xlu0 %v3176_v31, %s1593_s27  ;;  %v3180_v8 = vld [vmem:[#allocation44_spill] sm:$0xff] }
 0x154   : > { %v2548_v33 = vpop.permute.xlu1 %331  ;;  %v2550_v18 = vpop.permute.xlu0 %333 }
 0x156   : > { %809 = vrot.lane.b32.xlu1 %v793_v2, %s1593_s27  ;;  %811 = vrot.lane.b32.xlu0 %v3179_v23, %s1593_s27 }
 0x158   : > { %v2558_v21 = vpop.permute.xlu1 %335  ;;  %v2560_v9 = vpop.permute.xlu0 %337 }
 0x15a   : > { %813 = vrot.lane.b32.xlu1 %v3180_v8, %s1593_s27  ;;  %831 = vrot.lane.b32.xlu0 %v3160_v28, %s1594_s28 }
 0x15c   : > { %v2566_v42 = vpop.permute.xlu1 %339  ;;  %v2568_v47 = vpop.permute.xlu0 %365 }
 0x15e   : > { %833 = vrot.lane.b32.xlu1 %v707_v15, %s1594_s28  ;;  %835 = vrot.lane.b32.xlu0 %v3162_v50, %s1594_s28 }
 0x160   : > { %v2573_v7 = vpop.permute.xlu1 %367  ;;  %v2575_v31 = vpop.permute.xlu0 %369 }
 0x162   : > { %837 = vrot.lane.b32.xlu1 %v712_v10, %s1594_s28  ;;  %839 = vrot.lane.b32.xlu0 %v3164_v41, %s1594_s28  ;;  %v3181_v10 = vld [vmem:[#allocation42_spill] sm:$0xff] }
 0x164   : > { %v2580_v59 = vpop.permute.xlu1 %371  ;;  %v2582_v28 = vpop.permute.xlu0 %373 }
 0x166   : > { %841 = vrot.lane.b32.xlu1 %v717_v3, %s1594_s28  ;;  %843 = vrot.lane.b32.xlu0 %v3166_v56, %s1594_s28  ;;  %v3182_v3 = vrot.slane %v1827_v44, 2  ;;  %v675_v56 = vrot.slane %v2149_v14, 2  ;;  %v680_v44 = vrot.slane %v2164_v39, 2  ;;  %v3187_v14 = vld [vmem:[#allocation46_spill] sm:$0xff] }
 0x168   : > { %v2587_v15 = vpop.permute.xlu1 %375  ;;  %v2589_v50 = vpop.permute.xlu0 %377  ;;  %v2602_v23 = vsel %vm666_vm4, %v3182_v3, %v670_v32  ;;  %v2616_v48 = vsel %vm666_vm4, %v3185_v57, %v675_v56 }
 0x169   : > { %3183 = vst [vmem:[#allocation18_spill] sm:$0xff] %v2602_v23  ;;  %3186 = vst [vmem:[#allocation21_spill] sm:$0xff] %v2616_v48 }
 0x16a   : > { %845 = vrot.lane.b32.xlu1 %v722_v34, %s1594_s28  ;;  %863 = vrot.lane.b32.xlu0 %v3181_v10, %s1595_s29 }
 0x16c   : > { %v2595_v41 = vpop.permute.xlu1 %379  ;;  %v2597_v2 = vpop.permute.xlu0 %486 }
 0x16e   : > { %865 = vrot.lane.b32.xlu1 %v2602_v23, %s1595_s29  ;;  %867 = vrot.lane.b32.xlu0 %v3184_v1, %s1595_s29  ;;  %v3188_v1 = vrot.slane %v1894_v5, 2 }
 0x170   : > { %v2609_v34 = vpop.permute.xlu1 %488  ;;  %v2611_v8 = vpop.permute.xlu0 %490  ;;  %v2630_v23 = vsel %vm666_vm4, %v3188_v1, %v680_v44 }
 0x171   : > { %3189 = vst [vmem:[#allocation19_spill] sm:$0xff] %v2630_v23 }
 0x172   : > { %869 = vrot.lane.b32.xlu1 %v2616_v48, %s1595_s29  ;;  %871 = vrot.lane.b32.xlu0 %v3187_v14, %s1595_s29 }
 0x174   : > { %v2623_v32 = vpop.permute.xlu1 %492  ;;  %v2625_v3 = vpop.permute.xlu0 %494 }
 0x176   : > { %873 = vrot.lane.b32.xlu1 %v2630_v23, %s1595_s29  ;;  %875 = vrot.lane.b32.xlu0 %v3190_v45, %s1595_s29  ;;  %v3194_v45 = vld [vmem:[#allocation49_spill] sm:$0xff] }
 0x178   : > { %v2636_v57 = vpop.permute.xlu1 %496  ;;  %v2638_v39 = vpop.permute.xlu0 %498 }
 0x179   : > { %3191 = vst [vmem:[#allocation22_spill] sm:$0xff] %v2636_v57  ;;  %3192 = vst [vmem:[#allocation24_spill] sm:$0xff] %v2638_v39  ;;  %v3200_v39 = vld [vmem:[#allocation52_spill] sm:$0xff] }
 0x17a   : > { %877 = vrot.lane.b32.xlu1 %v2172_v60, %s1595_s29  ;;  %952 = vrot.lane.b32.xlu0 %v2167_v53, %s1592_s25  ;;  %v3195_v60 = vld [vmem:[#allocation50_spill] sm:$0xff] }
 0x17c   : > { %v2644_v5 = vpop.permute.xlu1 %500  ;;  %v563_v56 = vpop.permute.xlu0 %562 }
 0x17d   : > { %3193 = vst [vmem:[#allocation28_spill] sm:$0xff] %v2644_v5 }
 0x17e   : > { %954 = vrot.lane.b32.xlu1 %v2175_v40, %s1592_s25  ;;  %956 = vrot.lane.b32.xlu0 %v2180_v49, %s1592_s25 }
 0x180   : > { %v2650_v1 = vpop.permute.xlu1 %564  ;;  %v2652_v44 = vpop.permute.xlu0 %566 }
 0x182   : > { %958 = vrot.lane.b32.xlu1 %v3194_v45, %s1592_s25  ;;  %960 = vrot.lane.b32.xlu0 %v3195_v60, %s1592_s25  ;;  %v3201_v60 = vld [vmem:[#allocation10_spill] sm:$0xff] }
 0x183   : > { %v269_v45 = vadd.f32 %v2434_v11, %v3201_v60 }
 0x184   : > { %v2658_v23 = vpop.permute.xlu1 %568  ;;  %v2660_v14 = vpop.permute.xlu0 %570 }
 0x185   : > { %3196 = vst [vmem:[#allocation31_spill] sm:$0xff] %v2658_v23  ;;  %3197 = vst [vmem:[#allocation32_spill] sm:$0xff] %v2660_v14  ;;  %v3206_v23 = vld [vmem:[#allocation11_spill] sm:$0xff] }
 0x186   : > { %962 = vrot.lane.b32.xlu1 %v2198_v24, %s1592_s25  ;;  %964 = vrot.lane.b32.xlu0 %v2204_v20, %s1592_s25  ;;  %v317_v24 = vadd.f32 %v2484_v54, %v269_v45  ;;  %v3203_v20 = vld [vmem:[#allocation53_spill] sm:$0xff] }
 0x188   : > { %v2666_v48 = vpop.permute.xlu1 %572  ;;  %v2668_v5 = vpop.permute.xlu0 %574  ;;  %v349_v26 = vadd.f32 %v2529_v4, %v317_v24 }
 0x189   : > { %3198 = vst [vmem:[#allocation35_spill] sm:$0xff] %v2666_v48  ;;  %3199 = vst [vmem:[#allocation16_spill] sm:$0xff] %v2668_v5  ;;  %v3204_v48 = vld [vmem:[#allocation54_spill] sm:$0xff]  ;;  %v3205_v5 = vld [vmem:[#allocation12_spill] sm:$0xff] }
 0x18a   : > { %966 = vrot.lane.b32.xlu1 %v3200_v39, %s1592_s25  ;;  %1004 = vrot.lane.b32.xlu0 %v2212_v37, %s1593_s27  ;;  %v270_v39 = vadd.f32 %v2446_v55, %v3205_v5  ;;  %v271_v37 = vadd.f32 %v2448_v6, %v3206_v23  ;;  %v389_v45 = vadd.f32 %v2568_v47, %v349_v26  ;;  %v3209_v55 = vld [vmem:[#allocation56_spill] sm:$0xff]  ;;  %v3210_v6 = vld [vmem:[#allocation17_spill] sm:$0xff] }
 0x18b   : > { %v273_v24 = vadd.f32 %v2462_v61, %v3210_v6  ;;  %v3211_v61 = vld [vmem:[#allocation30_spill] sm:$0xff] }
 0x18c   : > { %v2676_v57 = vpop.permute.xlu1 %576  ;;  %v595_v14 = vpop.permute.xlu0 %594  ;;  %v319_v54 = vadd.f32 %v2495_v19, %v271_v37 }
 0x18d   : > { %3202 = vst [vmem:[#allocation38_spill] sm:$0xff] %v2676_v57  ;;  %v318_v57 = vadd.f32 %v2493_v63, %v270_v39  ;;  %v321_v47 = vadd.f32 %v2506_v13, %v273_v24 }
 0x18e   : > { %1006 = vrot.lane.b32.xlu1 %v3203_v20, %s1593_s27  ;;  %1008 = vrot.lane.b32.xlu0 %v3204_v48, %s1593_s27  ;;  %v3207_v20 = vld [vmem:[#allocation13_spill] sm:$0xff]  ;;  %v3208_v48 = vld [vmem:[#allocation55_spill] sm:$0xff]  ;;  %v351_v63 = vadd.f32 %v2540_v52, %v319_v54 }
 0x18f   : > { %v272_v46 = vadd.f32 %v2460_v27, %v3207_v20  ;;  %v350_v4 = vadd.f32 %v2538_v62, %v318_v57  ;;  %v275_v62 = vadd.f32 %v2475_v38, %v3211_v61  ;;  %v353_v13 = vadd.f32 %v2550_v18, %v321_v47  ;;  %v3216_v47 = vld [vmem:[#allocation26_spill] sm:$0xff] }
 0x190   : > { %v597_v11 = vpop.permute.xlu1 %596  ;;  %v599_v60 = vpop.permute.xlu0 %598  ;;  %v391_v37 = vadd.f32 %v2575_v31, %v351_v63  ;;  %v276_v18 = vadd.f32 %v2482_v16, %v1997_v36 }
 0x191   : > { %v320_v19 = vadd.f32 %v2504_v43, %v272_v46  ;;  %v390_v27 = vadd.f32 %v2573_v7, %v350_v4  ;;  %v3212_v46 = vld [vmem:[#allocation57_spill] sm:$0xff]  ;;  %v3213_v43 = vld [vmem:[#allocation58_spill] sm:$0xff]  ;;  %v323_v31 = vadd.f32 %v2518_v22, %v275_v62  ;;  %v3214_v22 = vld [vmem:[#allocation59_spill] sm:$0xff] }
 0x192   : > { %1010 = vrot.lane.b32.xlu1 %v3208_v48, %s1593_s27  ;;  %1012 = vrot.lane.b32.xlu0 %v3209_v55, %s1593_s27  ;;  %v434_v48 = vadd.f32 %v3151_v17, %v389_v45  ;;  %v274_v55 = vadd.f32 %v2473_v25, %v3112_v35  ;;  %v436_v45 = vadd.f32 %v3153_v29, %v391_v37  ;;  %v3217_v37 = vld [vmem:[#allocation31_spill] sm:$0xff] }
 0x193   : > { %v352_v52 = vadd.f32 %v2548_v33, %v320_v19  ;;  %v393_v33 = vadd.f32 %v2582_v28, %v353_v13  ;;  %v435_v54 = vadd.f32 %v2439_v0, %v390_v27  ;;  %v324_v29 = vadd.f32 %v2527_v51, %v276_v18  ;;  %v3223_v13 = vld [vmem:[#allocation18_spill] sm:$0xff] }
 0x194   : > { %v601_v39 = vpop.permute.xlu1 %600  ;;  %v603_v26 = vpop.permute.xlu0 %602  ;;  %v510_v7 = vadd.f32 %v2597_v2, %v434_v48  ;;  %v322_v17 = vadd.f32 %v2516_v12, %v274_v55  ;;  %v355_v12 = vadd.f32 %v2560_v9, %v323_v31  ;;  %v512_v0 = vadd.f32 %v2611_v8, %v436_v45 }
 0x195   : > { %v392_v25 = vadd.f32 %v2580_v59, %v352_v52  ;;  %v511_v59 = vadd.f32 %v2609_v34, %v435_v54  ;;  %v438_v63 = vadd.f32 %v3155_v30, %v393_v33  ;;  %v356_v8 = vadd.f32 %v2566_v42, %v324_v29  ;;  %v3219_v52 = vld [vmem:[#allocation22_spill] sm:$0xff]  ;;  %v3229_v29 = vld [vmem:[#allocation51_spill] sm:$0xff] }
 0x196   : > { %1014 = vrot.lane.b32.xlu1 %v3212_v46, %s1593_s27  ;;  %1016 = vrot.lane.b32.xlu0 %v3213_v43, %s1593_s27  ;;  %v586_v24 = vadd.f32 %v563_v56, %v510_v7  ;;  %v354_v2 = vadd.f32 %v2558_v21, %v322_v17  ;;  %v395_v16 = vadd.f32 %v2589_v50, %v355_v12  ;;  %v3224_v17 = vld [vmem:[#allocation45_spill] sm:$0xff] }
 0x197   : > { %v437_v21 = vadd.f32 %v2453_v58, %v392_v25  ;;  %v587_v19 = vadd.f32 %v2650_v1, %v511_v59  ;;  %v514_v58 = vadd.f32 %v2625_v3, %v438_v63  ;;  %v396_v50 = vadd.f32 %v2595_v41, %v356_v8  ;;  %v3215_v1 = vld [vmem:[#allocation15_spill] sm:$0xff]  ;;  %v3222_v41 = vld [vmem:[#allocation50_spill] sm:$0xff]  ;;  %v3225_v25 = vld [vmem:[#allocation29_spill] sm:$0xff] }
 0x198   : > { %v605_v57 = vpop.permute.xlu1 %604  ;;  %v607_v38 = vpop.permute.xlu0 %606  ;;  %v618_v28 = vadd.f32 %v595_v14, %v586_v24  ;;  %v394_v56 = vadd.f32 %v2587_v15, %v354_v2  ;;  %v440_v42 = vadd.f32 %v3216_v47, %v395_v16  ;;  %v3226_v24 = vld [vmem:[#allocation35_spill] sm:$0xff]  ;;  %v3227_v2 = vld [vmem:[#allocation16_spill] sm:$0xff]  ;;  %v3231_v16 = vld [vmem:[#allocation21_spill] sm:$0xff] }
 0x199   : > { %v513_v14 = vadd.f32 %v2623_v32, %v437_v21  ;;  %v619_v51 = vadd.f32 %v597_v11, %v587_v19  ;;  %v3220_v11 = vld [vmem:[#allocation24_spill] sm:$0xff]  ;;  %v441_v33 = vadd.f32 %v3225_v25, %v396_v50  ;;  %v3245_v25 = vld [vmem:[#allocation65_spill] sm:$0xff] }
 0x19a   : > { %1018 = vrot.lane.b32.xlu1 %v3214_v22, %s1593_s27  ;;  %1036 = vrot.lane.b32.xlu0 %v2167_v53, %s1594_s28  ;;  %v588_v53 = vadd.f32 %v2652_v44, %v512_v0  ;;  %v439_v44 = vadd.f32 %v3215_v1, %v394_v56  ;;  %v3228_v0 = vld [vmem:[#allocation28_spill] sm:$0xff]  ;;  %v3236_v1 = vld [vmem:[#allocation19_spill] sm:$0xff] }
 0x19b   : > { %v589_v48 = vadd.f32 %v3217_v37, %v513_v14  ;;  %v3238_v37 = vld [vmem:[#allocation61_spill] sm:$0xff] }
 0x19c   : > { %v609_v9 = vpop.permute.xlu1 %608  ;;  %v627_v4 = vpop.permute.xlu0 %626  ;;  %v620_v15 = vadd.f32 %v599_v60, %v588_v53  ;;  %v515_v3 = vadd.f32 %v3219_v52, %v439_v44  ;;  %v516_v60 = vadd.f32 %v3220_v11, %v440_v42  ;;  %v3242_v11 = vld [vmem:[#allocation63_spill] sm:$0xff] }
 0x19d   : > { %v650_v34 = vadd.f32 %v627_v4, %v618_v28  ;;  %v621_v46 = vadd.f32 %v601_v39, %v589_v48  ;;  %v517_v28 = vadd.f32 %v3228_v0, %v441_v33  ;;  %v3230_v39 = vld [vmem:[#allocation9_spill] sm:$0xff]  ;;  %v3232_v4 = vld [vmem:[#allocation46_spill] sm:$0xff]  ;;  %v3239_v48 = vld [vmem:[#allocation20_spill] sm:$0xff] }
 0x19e   : > { %1038 = vrot.lane.b32.xlu1 %v2175_v40, %s1594_s28  ;;  %1040 = vrot.lane.b32.xlu0 %v2180_v49, %s1594_s28  ;;  %v3218_v40 = vld [vmem:[#allocation32_spill] sm:$0xff]  ;;  %v591_v18 = vadd.f32 %v3226_v24, %v515_v3  ;;  %v592_v12 = vadd.f32 %v3227_v2, %v516_v60  ;;  %v3241_v3 = vld [vmem:[#allocation62_spill] sm:$0xff]  ;;  %v3246_v33 = vld [vmem:[#allocation27_spill] sm:$0xff] }
 0x19f   : > { %v695_v30 = vadd.f32 %v3181_v10, %v650_v34  ;;  %v590_v55 = vadd.f32 %v3218_v40, %v514_v58  ;;  %v3221_v10 = vld [vmem:[#allocation49_spill] sm:$0xff]  ;;  %v3233_v34 = vld [vmem:[#allocation38_spill] sm:$0xff]  ;;  %v3240_v40 = vld [vmem:[#allocation48_spill] sm:$0xff] }
 0x1a0   : > { %v629_v27 = vpop.permute.xlu1 %628  ;;  %v631_v32 = vpop.permute.xlu0 %630  ;;  %v624_v56 = vadd.f32 %v607_v38, %v592_v12  ;;  %v593_v8 = vadd.f32 %v3233_v34, %v517_v28  ;;  %v3237_v38 = vld [vmem:[#allocation47_spill] sm:$0xff]  ;;  %v3247_v2 = vld [vmem:[#allocation66_spill] sm:$0xff] }
 0x1a1   : > { %v651_v62 = vadd.f32 %v629_v27, %v619_v51  ;;  %v652_v49 = vadd.f32 %v631_v32, %v620_v15  ;;  %v622_v43 = vadd.f32 %v603_v26, %v590_v55  ;;  %v623_v26 = vadd.f32 %v605_v57, %v591_v18  ;;  %v3234_v51 = vld [vmem:[#allocation52_spill] sm:$0xff]  ;;  %v3248_v12 = vld [vmem:[#allocation67_spill] sm:$0xff] }
 0x1a2   : > { %1042 = vrot.lane.b32.xlu1 %v3221_v10, %s1594_s28  ;;  %1044 = vrot.lane.b32.xlu0 %v3222_v41, %s1594_s28  ;;  %v3235_v15 = vld [vmem:[#allocation60_spill] sm:$0xff]  ;;  %v625_v50 = vadd.f32 %v609_v9, %v593_v8 }
 0x1a3   : > { %v696_v7 = vadd.f32 %v3223_v13, %v651_v62  ;;  %v697_v31 = vadd.f32 %v3224_v17, %v652_v49 }
 0x1a4   : > { %v633_v54 = vpop.permute.xlu1 %632  ;;  %v635_v45 = vpop.permute.xlu0 %634 }
 0x1a5   : > { %v653_v22 = vadd.f32 %v633_v54, %v621_v46  ;;  %v654_v59 = vadd.f32 %v635_v45, %v622_v43  ;;  %v3243_v46 = vld [vmem:[#allocation25_spill] sm:$0xff]  ;;  %v3244_v43 = vld [vmem:[#allocation64_spill] sm:$0xff] }
 0x1a6   : > { %1046 = vrot.lane.b32.xlu1 %v3229_v29, %s1594_s28  ;;  %1048 = vrot.lane.b32.xlu0 %v3230_v39, %s1594_s28  ;;  %v3249_v29 = vld [vmem:[#allocation68_spill] sm:$0xff]  ;;  %v3250_v39 = vld [vmem:[#allocation69_spill] sm:$0xff] }
 0x1a7   : > { %v698_v21 = vadd.f32 %v3231_v16, %v653_v22  ;;  %v699_v63 = vadd.f32 %v3232_v4, %v654_v59  ;;  %v3251_v4 = vld [vmem:[#allocation70_spill] sm:$0xff] }
 0x1a8   : > { %v637_v19 = vpop.permute.xlu1 %636  ;;  %v639_v53 = vpop.permute.xlu0 %638 }
 0x1a9   : > { %v655_v14 = vadd.f32 %v637_v19, %v623_v26  ;;  %v656_v58 = vadd.f32 %v639_v53, %v624_v56 }
 0x1aa   : > { %1050 = vrot.lane.b32.xlu1 %v3234_v51, %s1594_s28  ;;  %1068 = vrot.lane.b32.xlu0 %v3235_v15, %s1595_s29 }
 0x1ab   : > { %v700_v57 = vadd.f32 %v3236_v1, %v655_v14  ;;  %v701_v44 = vadd.f32 %v3237_v38, %v656_v58  ;;  %v3253_v14 = vld [vmem:[#allocation72_spill] sm:$0xff]  ;;  %v3254_v58 = vld [vmem:[#allocation73_spill] sm:$0xff]  ;;  %v3255_v38 = vld [vmem:[#allocation74_spill] sm:$0xff] }
 0x1ac   : > { %v641_v47 = vpop.permute.xlu1 %640  ;;  %v724_v42 = vpop.permute.xlu0 %723 }
 0x1ad   : > { %v657_v27 = vadd.f32 %v641_v47, %v625_v50  ;;  %v747_v32 = vadd.f32 %v724_v42, %v695_v30 }
 0x1ae   : > { %1070 = vrot.lane.b32.xlu1 %v3238_v37, %s1595_s29  ;;  %1072 = vrot.lane.b32.xlu0 %v3239_v48, %s1595_s29 }
 0x1af   : > { %v702_v55 = vadd.f32 %v3240_v40, %v657_v27  ;;  %v3257_v40 = vld [vmem:[#allocation76_spill] sm:$0xff] }
 0x1b0   : > { %v726_v62 = vpop.permute.xlu1 %725  ;;  %v728_v49 = vpop.permute.xlu0 %727 }
 0x1b1   : > { %v748_v52 = vadd.f32 %v726_v62, %v696_v7  ;;  %v749_v9 = vadd.f32 %v728_v49, %v697_v31 }
 0x1b2   : > { %1074 = vrot.lane.b32.xlu1 %v3241_v3, %s1595_s29  ;;  %1076 = vrot.lane.b32.xlu0 %v3242_v11, %s1595_s29 }
 0x1b4   : > { %v730_v60 = vpop.permute.xlu1 %729  ;;  %v732_v30 = vpop.permute.xlu0 %731 }
 0x1b5   : > { %v750_v10 = vadd.f32 %v730_v60, %v698_v21  ;;  %v751_v41 = vadd.f32 %v732_v30, %v699_v63  ;;  %v3252_v63 = vld [vmem:[#allocation71_spill] sm:$0xff]  ;;  %v3259_v60 = vld [vmem:[#allocation33_spill] sm:$0xff] }
 0x1b6   : > { %1078 = vrot.lane.b32.xlu1 %v3243_v46, %s1595_s29  ;;  %1080 = vrot.lane.b32.xlu0 %v3244_v43, %s1595_s29  ;;  %v3260_v30 = vld [vmem:[#allocation39_spill] sm:$0xff] }
 0x1b8   : > { %v734_v13 = vpop.permute.xlu1 %733  ;;  %v736_v17 = vpop.permute.xlu0 %735 }
 0x1b9   : > { %v752_v7 = vadd.f32 %v734_v13, %v700_v57  ;;  %v753_v31 = vadd.f32 %v736_v17, %v701_v44  ;;  %v3256_v44 = vld [vmem:[#allocation75_spill] sm:$0xff] }
 0x1ba   : > { %1082 = vrot.lane.b32.xlu1 %v3245_v25, %s1595_s29  ;;  %1165 = vrot.lane.b32.xlu0 %v3246_v33, %s1592_s25 }
 0x1bc   : > { %v738_v54 = vpop.permute.xlu1 %737  ;;  %v800_v45 = vpop.permute.xlu0 %799 }
 0x1bd   : > { %v754_v24 = vadd.f32 %v738_v54, %v702_v55  ;;  %v823_v18 = vadd.f32 %v800_v45, %v747_v32  ;;  %v3258_v55 = vld [vmem:[#allocation77_spill] sm:$0xff] }
 0x1be   : > { %1167 = vrot.lane.b32.xlu1 %v3247_v2, %s1592_s25  ;;  %1169 = vrot.lane.b32.xlu0 %v3248_v12, %s1592_s25 }
 0x1c0   : > { %v802_v22 = vpop.permute.xlu1 %801  ;;  %v804_v59 = vpop.permute.xlu0 %803 }
 0x1c1   : > { %v824_v0 = vadd.f32 %v802_v22, %v748_v52  ;;  %v825_v28 = vadd.f32 %v804_v59, %v749_v9 }
 0x1c2   : > { %1171 = vrot.lane.b32.xlu1 %v3249_v29, %s1592_s25  ;;  %1173 = vrot.lane.b32.xlu0 %v3250_v39, %s1592_s25 }
 0x1c4   : > { %v806_v26 = vpop.permute.xlu1 %805  ;;  %v808_v56 = vpop.permute.xlu0 %807 }
 0x1c5   : > { %v826_v16 = vadd.f32 %v806_v26, %v750_v10  ;;  %v827_v21 = vadd.f32 %v808_v56, %v751_v41 }
 0x1c6   : > { %1175 = vrot.lane.b32.xlu1 %v3251_v4, %s1592_s25  ;;  %1177 = vrot.lane.b32.xlu0 %v3252_v63, %s1592_s25 }
 0x1c8   : > { %v810_v19 = vpop.permute.xlu1 %809  ;;  %v812_v53 = vpop.permute.xlu0 %811 }
 0x1c9   : > { %v828_v34 = vadd.f32 %v810_v19, %v752_v7  ;;  %v829_v8 = vadd.f32 %v812_v53, %v753_v31  ;;  %v3261_v7 = vld [vmem:[#allocation78_spill] sm:$0xff] }
 0x1ca   : > { %1179 = vrot.lane.b32.xlu1 %v3253_v14, %s1592_s25  ;;  %1217 = vrot.lane.b32.xlu0 %v3254_v58, %s1593_s27  ;;  %v1487_v58 = vld [vmem:[#allocation2 + $0x28] sm:$0xf] }
 0x1cc   : > { %v814_v51 = vpop.permute.xlu1 %813  ;;  %v832_v50 = vpop.permute.xlu0 %831 }
 0x1cd   : > { %v830_v1 = vadd.f32 %v814_v51, %v754_v24  ;;  %v855_v57 = vadd.f32 %v832_v50, %v823_v18  ;;  %v1101_v51 = vmul.f32 -0.083333336, %v1487_v58 }
 0x1ce   : > { %1219 = vrot.lane.b32.xlu1 %v3255_v38, %s1593_s27  ;;  %1221 = vrot.lane.b32.xlu0 %v3256_v44, %s1593_s27  ;;  %v1119_v44 = vrot.slane %v3210_v6, 4 }
 0x1cf   : > { %v1117_v38 = vrot.slane %v1101_v51, 4 }
 0x1d0   : > { %v834_v47 = vpop.permute.xlu1 %833  ;;  %v836_v42 = vpop.permute.xlu0 %835 }
 0x1d1   : > { %v856_v27 = vadd.f32 %v834_v47, %v824_v0  ;;  %v857_v32 = vadd.f32 %v836_v42, %v825_v28  ;;  %v1120_v47 = vrot.slane %v3112_v35, 4  ;;  %v1124_v35 = vrot.slane %v3211_v61, 4 }
 0x1d2   : > { %1223 = vrot.lane.b32.xlu1 %v3257_v40, %s1593_s27  ;;  %1225 = vrot.lane.b32.xlu0 %v3258_v55, %s1593_s27  ;;  %v3263_v61 = vrot.slane %v1997_v36, 4 }
 0x1d3   : > { %v2871_v6 = vsel %vm1108_vm6, %v1119_v44, %v1120_v47 }
 0x1d4   : > { %v838_v62 = vpop.permute.xlu1 %837  ;;  %v840_v49 = vpop.permute.xlu0 %839 }
 0x1d5   : > { %v858_v52 = vadd.f32 %v838_v62, %v826_v16  ;;  %v859_v9 = vadd.f32 %v840_v49, %v827_v21  ;;  %v1486_v21 = vld [vmem:[#allocation2 + $0x10] sm:$0xf] }
 0x1d6   : > { %1227 = vrot.lane.b32.xlu1 %v3259_v60, %s1593_s27  ;;  %1229 = vrot.lane.b32.xlu0 %v3260_v30, %s1593_s27  ;;  %v1100_v19 = vmul.f32 -0.083333336, %v1486_v21 }
 0x1d8   : > { %v842_v10 = vpop.permute.xlu1 %841  ;;  %v844_v41 = vpop.permute.xlu0 %843 }
 0x1d9   : > { %v860_v13 = vadd.f32 %v842_v10, %v828_v34  ;;  %v861_v17 = vadd.f32 %v844_v41, %v829_v8  ;;  %v1114_v8 = vrot.slane %v3206_v23, 4 }
 0x1da   : > { %1231 = vrot.lane.b32.xlu1 %v3261_v7, %s1593_s27  ;;  %1249 = vrot.lane.b32.xlu0 %v3246_v33, %s1594_s28 }
 0x1dc   : > { %v846_v31 = vpop.permute.xlu1 %845  ;;  %v864_v54 = vpop.permute.xlu0 %863 }
 0x1dd   : > { %v862_v45 = vadd.f32 %v846_v31, %v830_v1  ;;  %v887_v24 = vadd.f32 %v864_v54, %v855_v57 }
 0x1de   : > { %1251 = vrot.lane.b32.xlu1 %v3247_v2, %s1594_s28  ;;  %1253 = vrot.lane.b32.xlu0 %v3248_v12, %s1594_s28 }
 0x1df   : > { %v924_v18 = vadd.f32 %v3235_v15, %v887_v24  ;;  %v1110_v15 = vrot.slane %v3205_v5, 4  ;;  %v1115_v5 = vrot.slane %v3207_v20, 4 }
 0x1e0   : > { %v866_v22 = vpop.permute.xlu1 %865  ;;  %v868_v59 = vpop.permute.xlu0 %867 }
 0x1e1   : > { %v888_v0 = vadd.f32 %v866_v22, %v856_v27  ;;  %v889_v28 = vadd.f32 %v868_v59, %v857_v32  ;;  %v2858_v57 = vsel %vm1108_vm6, %v1114_v8, %v1115_v5  ;;  %v1488_v32 = vld [vmem:[#allocation2 + $0x40] sm:$0xf] }
 0x1e2   : > { %1255 = vrot.lane.b32.xlu1 %v3249_v29, %s1594_s28  ;;  %1257 = vrot.lane.b32.xlu0 %v3250_v39, %s1594_s28  ;;  %v3262_v29 = vld [vmem:[#allocation10_spill] sm:$0xff]  ;;  %v1102_v40 = vmul.f32 -0.083333336, %v1488_v32 }
 0x1e3   : > { %v925_v33 = vadd.f32 %v3238_v37, %v888_v0  ;;  %v926_v26 = vadd.f32 %v3239_v48, %v889_v28  ;;  %v1109_v39 = vrot.slane %v3262_v29, 4 }
 0x1e4   : > { %v870_v2 = vpop.permute.xlu1 %869  ;;  %v872_v56 = vpop.permute.xlu0 %871 }
 0x1e5   : > { %v890_v16 = vadd.f32 %v870_v2, %v858_v52  ;;  %v891_v12 = vadd.f32 %v872_v56, %v859_v9  ;;  %v2875_v52 = vsel %vm1108_vm6, %v1115_v5, %v1117_v38  ;;  %v1122_v9 = vrot.slane %v1102_v40, 4 }
 0x1e6   : > { %1259 = vrot.lane.b32.xlu1 %v3251_v4, %s1594_s28  ;;  %1261 = vrot.lane.b32.xlu0 %v3252_v63, %s1594_s28  ;;  %v2849_v4 = vsel %vm1108_vm6, %v1109_v39, %v1110_v15  ;;  %v1112_v63 = vrot.slane %v1100_v19, 4 }
 0x1e7   : > { %v927_v37 = vadd.f32 %v3241_v3, %v890_v16  ;;  %v928_v48 = vadd.f32 %v3242_v11, %v891_v12  ;;  %v1123_v41 = vsel %vm1108_vm6, %v1120_v47, %v1122_v9 }
 0x1e8   : > { %v874_v53 = vpop.permute.xlu1 %873  ;;  %v876_v34 = vpop.permute.xlu0 %875 }
 0x1e9   : > { %v892_v50 = vadd.f32 %v874_v53, %v860_v13  ;;  %v893_v1 = vadd.f32 %v876_v34, %v861_v17  ;;  %v1126_v13 = vsel %vm1108_vm6, %v1124_v35, %v3263_v61 }
 0x1ea   : > { %1263 = vrot.lane.b32.xlu1 %v3253_v14, %s1594_s28  ;;  %1281 = vrot.lane.b32.xlu0 %v2849_v4, %s1595_s29  ;;  %v2863_v14 = vsel %vm1108_vm6, %v1110_v15, %v1112_v63 }
 0x1eb   : > { %v929_v3 = vadd.f32 %v3243_v46, %v892_v50  ;;  %v930_v23 = vadd.f32 %v3244_v43, %v893_v1 }
 0x1ec   : > { %v878_v11 = vpop.permute.xlu1 %877  ;;  %v953_v20 = vpop.permute.xlu0 %952 }
 0x1ed   : > { %v894_v42 = vadd.f32 %v878_v11, %v862_v45  ;;  %v976_v27 = vadd.f32 %v953_v20, %v924_v18  ;;  %v3264_v45 = vld [vmem:[#allocation14_spill] sm:$0xff] }
 0x1ee   : > { %1283 = vrot.lane.b32.xlu1 %v2863_v14, %s1595_s29  ;;  %1285 = vrot.lane.b32.xlu0 %v2858_v57, %s1595_s29 }
 0x1ef   : > { %v931_v46 = vadd.f32 %v3245_v25, %v894_v42 }
 0x1f0   : > { %v955_v43 = vpop.permute.xlu1 %954  ;;  %v957_v55 = vpop.permute.xlu0 %956 }
 0x1f1   : > { %v977_v62 = vadd.f32 %v955_v43, %v925_v33  ;;  %v978_v49 = vadd.f32 %v957_v55, %v926_v26 }
 0x1f2   : > { %1287 = vrot.lane.b32.xlu1 %v2875_v52, %s1595_s29  ;;  %1289 = vrot.lane.b32.xlu0 %v2871_v6, %s1595_s29 }
 0x1f4   : > { %v959_v25 = vpop.permute.xlu1 %958  ;;  %v961_v60 = vpop.permute.xlu0 %960 }
 0x1f5   : > { %v979_v30 = vadd.f32 %v959_v25, %v927_v37  ;;  %v980_v10 = vadd.f32 %v961_v60, %v928_v48 }
 0x1f6   : > { %1291 = vrot.lane.b32.xlu1 %v1123_v41, %s1595_s29  ;;  %1293 = vrot.lane.b32.xlu0 %v1126_v13, %s1595_s29 }
 0x1f8   : > { %v963_v17 = vpop.permute.xlu1 %962  ;;  %v965_v7 = vpop.permute.xlu0 %964 }
 0x1f9   : > { %v981_v31 = vadd.f32 %v963_v17, %v929_v3  ;;  %v982_v54 = vadd.f32 %v965_v7, %v930_v23 }
 0x1fa   : > { %1295 = vrot.lane.b32.xlu1 %v3264_v45, %s1595_s29 }
 0x1fc   : > { %v967_v24 = vpop.permute.xlu1 %966  ;;  %v1005_v18 = vpop.permute.xlu0 %1004 }
 0x1fd   : > { %v983_v22 = vadd.f32 %v967_v24, %v931_v46  ;;  %v1028_v59 = vadd.f32 %v1005_v18, %v976_v27 }
 0x200   : > { %v1007_v0 = vpop.permute.xlu1 %1006  ;;  %v1009_v28 = vpop.permute.xlu0 %1008 }
 0x201   : > { %v1029_v36 = vadd.f32 %v1007_v0, %v977_v62  ;;  %v1030_v33 = vadd.f32 %v1009_v28, %v978_v49 }
 0x204   : > { %v1011_v26 = vpop.permute.xlu1 %1010  ;;  %v1013_v2 = vpop.permute.xlu0 %1012 }
 0x205   : > { %v1031_v56 = vadd.f32 %v1011_v26, %v979_v30  ;;  %v1032_v16 = vadd.f32 %v1013_v2, %v980_v10 }
 0x208   : > { %v1015_v12 = vpop.permute.xlu1 %1014  ;;  %v1017_v15 = vpop.permute.xlu0 %1016 }
 0x209   : > { %v1033_v21 = vadd.f32 %v1015_v12, %v981_v31  ;;  %v1034_v19 = vadd.f32 %v1017_v15, %v982_v54 }
 0x20c   : > { %v1019_v29 = vpop.permute.xlu1 %1018  ;;  %v1037_v39 = vpop.permute.xlu0 %1036 }
 0x20d   : > { %v1035_v37 = vadd.f32 %v1019_v29, %v983_v22  ;;  %v1060_v48 = vadd.f32 %v1037_v39, %v1028_v59 }
 0x210   : > { %v1039_v53 = vpop.permute.xlu1 %1038  ;;  %v1041_v34 = vpop.permute.xlu0 %1040 }
 0x211   : > { %v1061_v8 = vadd.f32 %v1039_v53, %v1029_v36  ;;  %v1062_v5 = vadd.f32 %v1041_v34, %v1030_v33 }
 0x214   : > { %v1043_v58 = vpop.permute.xlu1 %1042  ;;  %v1045_v51 = vpop.permute.xlu0 %1044 }
 0x215   : > { %v1063_v50 = vadd.f32 %v1043_v58, %v1031_v56  ;;  %v1064_v1 = vadd.f32 %v1045_v51, %v1032_v16 }
 0x218   : > { %v1047_v63 = vpop.permute.xlu1 %1046  ;;  %v1049_v3 = vpop.permute.xlu0 %1048 }
 0x219   : > { %v1065_v23 = vadd.f32 %v1047_v63, %v1033_v21  ;;  %v1066_v11 = vadd.f32 %v1049_v3, %v1034_v19 }
 0x21c   : > { %v1051_v20 = vpop.permute.xlu1 %1050  ;;  %v1069_v38 = vpop.permute.xlu0 %1068 }
 0x21d   : > { %v1067_v44 = vadd.f32 %v1051_v20, %v1035_v37  ;;  %v1092_v47 = vadd.f32 %v1069_v38, %v1060_v48 }
 0x21f   : > { %v1137_v42 = vadd.f32 %v2849_v4, %v1092_v47 }
 0x220   : > { %v1071_v27 = vpop.permute.xlu1 %1070  ;;  %v1073_v32 = vpop.permute.xlu0 %1072 }
 0x221   : > { %v1093_v40 = vadd.f32 %v1071_v27, %v1061_v8  ;;  %v1094_v46 = vadd.f32 %v1073_v32, %v1062_v5 }
 0x223   : > { %v1138_v43 = vadd.f32 %v2863_v14, %v1093_v40  ;;  %v1139_v55 = vadd.f32 %v2858_v57, %v1094_v46 }
 0x224   : > { %v1075_v35 = vpop.permute.xlu1 %1074  ;;  %v1077_v62 = vpop.permute.xlu0 %1076 }
 0x225   : > { %v1095_v49 = vadd.f32 %v1075_v35, %v1063_v50  ;;  %v1096_v9 = vadd.f32 %v1077_v62, %v1064_v1 }
 0x227   : > { %v1140_v25 = vadd.f32 %v2875_v52, %v1095_v49  ;;  %v1141_v60 = vadd.f32 %v2871_v6, %v1096_v9 }
 0x228   : > { %v1079_v30 = vpop.permute.xlu1 %1078  ;;  %v1081_v10 = vpop.permute.xlu0 %1080 }
 0x229   : > { %v1097_v61 = vadd.f32 %v1079_v30, %v1065_v23  ;;  %v1098_v4 = vadd.f32 %v1081_v10, %v1066_v11 }
 0x22b   : > { %v1142_v17 = vadd.f32 %v1123_v41, %v1097_v61  ;;  %v1143_v7 = vadd.f32 %v1126_v13, %v1098_v4 }
 0x22c   : > { %v1083_v31 = vpop.permute.xlu1 %1082  ;;  %v1166_v54 = vpop.permute.xlu0 %1165 }
 0x22d   : > { %v1099_v24 = vadd.f32 %v1083_v31, %v1067_v44  ;;  %v1189_v19 = vadd.f32 %v1166_v54, %v1137_v42 }
 0x22f   : > { %v1144_v14 = vadd.f32 %v3264_v45, %v1099_v24 }
 0x230   : > { %v1168_v57 = vpop.permute.xlu1 %1167  ;;  %v1170_v18 = vpop.permute.xlu0 %1169 }
 0x231   : > { %v1190_v48 = vadd.f32 %v1168_v57, %v1138_v43  ;;  %v1191_v53 = vadd.f32 %v1170_v18, %v1139_v55 }
 0x234   : > { %v1172_v22 = vpop.permute.xlu1 %1171  ;;  %v1174_v59 = vpop.permute.xlu0 %1173 }
 0x235   : > { %v1192_v1 = vadd.f32 %v1172_v22, %v1140_v25  ;;  %v1193_v63 = vadd.f32 %v1174_v59, %v1141_v60 }
 0x238   : > { %v1176_v0 = vpop.permute.xlu1 %1175  ;;  %v1178_v28 = vpop.permute.xlu0 %1177 }
 0x239   : > { %v1194_v27 = vadd.f32 %v1176_v0, %v1142_v17  ;;  %v1195_v32 = vadd.f32 %v1178_v28, %v1143_v7 }
 0x23c   : > { %v1180_v52 = vpop.permute.xlu1 %1179  ;;  %v1218_v36 = vpop.permute.xlu0 %1217 }
 0x23d   : > { %v1241_v37 = vadd.f32 %v1218_v36, %v1189_v19  ;;  %v1196_v25 = vadd.f32 %v1180_v52, %v1144_v14 }
 0x240   : > { %v1220_v6 = vpop.permute.xlu1 %1219  ;;  %v1222_v33 = vpop.permute.xlu0 %1221 }
 0x241   : > { %v1242_v58 = vadd.f32 %v1220_v6, %v1190_v48  ;;  %v1243_v51 = vadd.f32 %v1222_v33, %v1191_v53 }
 0x244   : > { %v1224_v26 = vpop.permute.xlu1 %1223  ;;  %v1226_v2 = vpop.permute.xlu0 %1225 }
 0x245   : > { %v1244_v38 = vadd.f32 %v1224_v26, %v1192_v1  ;;  %v1245_v44 = vadd.f32 %v1226_v2, %v1193_v63 }
 0x248   : > { %v1228_v56 = vpop.permute.xlu1 %1227  ;;  %v1230_v41 = vpop.permute.xlu0 %1229 }
 0x249   : > { %v1246_v35 = vadd.f32 %v1228_v56, %v1194_v27  ;;  %v1247_v62 = vadd.f32 %v1230_v41, %v1195_v32 }
 0x24c   : > { %v1232_v13 = vpop.permute.xlu1 %1231  ;;  %v1250_v16 = vpop.permute.xlu0 %1249 }
 0x24d   : > { %v1273_v34 = vadd.f32 %v1250_v16, %v1241_v37  ;;  %v1248_v4 = vadd.f32 %v1232_v13, %v1196_v25 }
 0x250   : > { %v1252_v12 = vpop.permute.xlu1 %1251  ;;  %v1254_v15 = vpop.permute.xlu0 %1253 }
 0x251   : > { %v1274_v3 = vadd.f32 %v1252_v12, %v1242_v58  ;;  %v1275_v23 = vadd.f32 %v1254_v15, %v1243_v51 }
 0x254   : > { %v1256_v21 = vpop.permute.xlu1 %1255  ;;  %v1258_v45 = vpop.permute.xlu0 %1257 }
 0x255   : > { %v1276_v40 = vadd.f32 %v1256_v21, %v1244_v38  ;;  %v1277_v46 = vadd.f32 %v1258_v45, %v1245_v44 }
 0x258   : > { %v1260_v29 = vpop.permute.xlu1 %1259  ;;  %v1262_v39 = vpop.permute.xlu0 %1261 }
 0x259   : > { %v1278_v60 = vadd.f32 %v1260_v29, %v1246_v35  ;;  %v1279_v30 = vadd.f32 %v1262_v39, %v1247_v62 }
 0x25c   : > { %v1264_v8 = vpop.permute.xlu1 %1263  ;;  %v1282_v5 = vpop.permute.xlu0 %1281 }
 0x25d   : > { %v1305_v50 = vadd.f32 %v1282_v5, %v1273_v34  ;;  %v1280_v31 = vadd.f32 %v1264_v8, %v1248_v4 }
 0x25f   : > { %1314 = vst.msk [vmem:[%s2897_s2] sm:$0xff] %vm1313_vm7, %v1305_v50 }
 0x260   : > { %v1284_v11 = vpop.permute.xlu1 %1283  ;;  %v1286_v20 = vpop.permute.xlu0 %1285 }
 0x261   : > { %v1306_v47 = vadd.f32 %v1284_v11, %v1274_v3  ;;  %v1307_v42 = vadd.f32 %v1286_v20, %v1275_v23 }
 0x263   : > { %1315 = vst.msk [vmem:[%s2897_s2 + $0x8] sm:$0xff] %vm1313_vm7, %v1306_v47  ;;  %1316 = vst.msk [vmem:[%s2897_s2 + $0x10] sm:$0xff] %vm1313_vm7, %v1307_v42 }
 0x264   : > { %v1288_v43 = vpop.permute.xlu1 %1287  ;;  %v1290_v55 = vpop.permute.xlu0 %1289 }
 0x265   : > { %v1308_v49 = vadd.f32 %v1288_v43, %v1276_v40  ;;  %v1309_v9 = vadd.f32 %v1290_v55, %v1277_v46 }
 0x267   : > { %1317 = vst.msk [vmem:[%s2897_s2 + $0x18] sm:$0xff] %vm1313_vm7, %v1308_v49  ;;  %1318 = vst.msk [vmem:[%s2897_s2 + $0x20] sm:$0xff] %vm1313_vm7, %v1309_v9 }
 0x268   : > { %v1292_v10 = vpop.permute.xlu1 %1291  ;;  %v1294_v61 = vpop.permute.xlu0 %1293 }
 0x269   : > { %v1310_v17 = vadd.f32 %v1292_v10, %v1278_v60  ;;  %v1311_v7 = vadd.f32 %v1294_v61, %v1279_v30 }
 0x26b   : > { %1319 = vst.msk [vmem:[%s2897_s2 + $0x28] sm:$0xff] %vm1313_vm7, %v1310_v17  ;;  %1320 = vst.msk [vmem:[%s2897_s2 + $0x30] sm:$0xff] %vm1313_vm7, %v1311_v7 }
 0x26c   : > { %v1296_v54 = vpop.permute.xlu1 %1295 }
 0x26d   : > { %v1312_v24 = vadd.f32 %v1296_v54, %v1280_v31 }
 0x26f   : > { %1321 = vst.msk [vmem:[%s2897_s2 + $0x38] sm:$0xff] %vm1313_vm7, %v1312_v24 }
 0x270   : > { %1532 = shalt.err (!%p1529_p2)
}
 0x271   : > { %s1533_s22 = scalar_lea.hbm %s2918_s13, 1024  ;;  %s1537_s30 = scalar_lea.hbm %s2967_s1, 2048 }
 0x272   : > { %p1534_p4 = scmp.ne.s32.totalorder %s2918_s13, %s1533_s22  ;;  %p1538_p9 = scmp.lt.u32.totalorder %s2918_s13, %s2967_s1 }
 0x273   : > { %p1539_p1 = scmp.lt.u32.totalorder %s1537_s30, %s1533_s22  ;;  %p1541_p6 = scmp.lt.u32.totalorder %s1533_s22, %s2918_s13 }
 0x274   : > { %p1535_p5 = pnand %p1534_p4, %p3265_p11 }
 0x275   : > { %p1540_p3 = por %p1539_p1, %p1538_p9 }
 0x276   : > { %p1536_p7 = pneg %p1535_p5 }
 0x277   : > { %p1542_p12 = por %p1541_p6, %p1540_p3 }
 0x279   : > { %p1543_p13 = pnand %p1542_p12, %p1536_p7 }
 0x27b   : > { %1546 = shalt.err (!%p1543_p13)
}
 0x27c   : > { %s1597_s27 = smov 128   ;;  %s1598_s28 = smov 8  }
 0x27d   : > { %1432 = dma.vmem_to_hbm [thread:$0]  (%p3265_p11), %s2920_s4, 1024, %s2918_s13, %s1323_s10, %s1597_s27, %s1597_s27, %s1598_s28  }
 0x27e PF: > { %s1352_s29 = sand.u32 1, %s1573_s6   ;;  %p3266_p8 = scmp.ne.s32.totalorder %s3050_s19, 0 }
 0x27f   : > { %p3267_p10 = scmp.ge.s32.totalorder %s1585_s9, 2  ;;  %s1353_s2 = scalar_lea.sflag [#allocation5], %s1352_s29 }
 0x281   : > { %p1439_p0 = pnand %p3267_p10, %p3266_p8 }
 0x283   : > { %1568 = dma.done.wait (!%p1439_p0), %s1353_s2, 1024  }
 0x284   : > { %1570 = vsyncadd (!%p1439_p0), %s1353_s2, 4294966272  ;;  %p14_p2 = scmp.ge.s32.totalorder %s1634_s12, 4   ;;  %s3268_s6 = smov %s1577_s7 }
 0x285   : > { %s3269_s7 = smov %s1581_s8  ;;  %s3270_s8 = smov %s1646_s15 }
 0x286   : > { %s3271_s9 = smov %s1634_s12  ;;  %16 = sbr.rel (!%p14_p2) target bundleno = 5 (0x5), region = 69 }
 0x28d   :  { %1358 = vsyncpa [#allocation4], 1 }
 0x28e   :  { %1360 = vsyncpa [#allocation4 + $0x1], 1 }
 0x28f   :  { %1361 = vsyncpa [#allocation5], 1 }
 0x290   :  { %1363 = vsyncpa [#allocation5 + $0x1], 1 }

</bundles_post_ra>
